<compile_context>
chip_gen: v6e
topology: v6e:2x2x1
jax: 0.10.0
libtpu: 0.0.40
codegen_flags: <defaults>
</compile_context>

<pallas_src>
import numpy as np
import jax
import jax.numpy as jnp
from jax.experimental import pallas as pl
from jax.experimental.pallas import tpu as pltpu


# ---------------------------------------------------------------------------
# Static network geometry (synthetic MetricGAN-style discriminator)
# ---------------------------------------------------------------------------
H = W = 16                                   # (F, T) spectrogram patch
CIN = 2                                      # channel 0 = y_mag, channel 1 = x_mag
K, STRIDE, PAD = 4, 2, 1
H1 = W1 = (H + 2 * PAD - K) // STRIDE + 1    # 8
H2 = W2 = (H1 + 2 * PAD - K) // STRIDE + 1   # 4
C1, C2 = 8, 16                               # conv channel counts
CP = 128                                     # lane-padded width for the MLP head
IN_DIM = H * W * CIN                         # 512 = flattened conv1 input
MID_DIM = H1 * W1 * C1                       # 512 = flattened conv1 output
OUT2_DIM = H2 * W2 * C2                      # 256 = flattened conv2 output


# ---------------------------------------------------------------------------
# Fused kernel: conv1+PReLU -> conv2+PReLU -> global max-pool -> MLP -> sigmoid
# -> (pred - 1)^2, all in vregs/VMEM.  Grid is over batch blocks ("parallel").
# ---------------------------------------------------------------------------
def _make_fused_kernel(n_valid, b_blk):
    def kernel(x_ref,                         # (b_blk, 512)  f32  flattened inputs
               t1_ref, b1_ref, a1_ref,        # (512, 512) bf16, (1, 512) f32 x2
               t2_ref, b2_ref, a2_ref,        # (512, 256) bf16, (1, 256) f32 x2
               fw1_ref, fb1_ref, fa1_ref,     # (16, 128) bf16, (1, 128) f32 x2
               fw2_ref, fb2_ref,              # (128, 128) bf16 (col 0 real), (1, 128) f32
               out_ref):                      # (b_blk, 128) f32
        # ---- conv1 (4x4 / s2 / p1, CIN->C1) as ONE dense GEMM + bias + PReLU ----
        x = x_ref[...].astype(jnp.bfloat16)                               # (b_blk, 512)
        o1 = jnp.dot(x, t1_ref[...], preferred_element_type=jnp.float32)  # (b_blk, 512)
        o1 = o1 + b1_ref[...]
        o1 = jnp.where(o1 >= 0.0, o1, a1_ref[...] * o1)                   # lane-tiled PReLU

        # ---- conv2 (4x4 / s2 / p1, C1->C2) as ONE dense GEMM + bias + PReLU ----
        o2 = jnp.dot(o1.astype(jnp.bfloat16), t2_ref[...],
                     preferred_element_type=jnp.float32)                  # (b_blk, 256)
        o2 = o2 + b2_ref[...]
        o2 = jnp.where(o2 >= 0.0, o2, a2_ref[...] * o2)

        # ---- global spatial max-pool: lane index = spatial*C2 + channel ----
        pooled = o2
        width = OUT2_DIM
        while width > C2:                                                 # 4 folding steps
            width //= 2
            pooled = jnp.maximum(pooled[:, :width], pooled[:, width:2 * width])
        # pooled: (b_blk, C2)

        # ---- MLP head (lane-padded to 128; padded lanes provably stay 0) ----
        h = jnp.dot(pooled.astype(jnp.bfloat16), fw1_ref[...],
                    preferred_element_type=jnp.float32) + fb1_ref[...]    # (b_blk, 128)
        h = jnp.where(h >= 0.0, h, fa1_ref[...] * h)
        logit = jnp.dot(h.astype(jnp.bfloat16), fw2_ref[...],
                        preferred_element_type=jnp.float32) + fb2_ref[...]
        pred = 1.0 / (1.0 + jnp.exp(-logit))                              # lane 0 is the real pred
        d = pred - 1.0                                                    # MSE vs ones(batch)
        sq = d * d                                                        # (b_blk, 128)

        # Lane-dense store.  Only (valid row, lane 0) carries data; everything else is
        # written as exact zero so the wrapper can do a plain sum over the whole output.
        col = jax.lax.broadcasted_iota(jnp.int32, sq.shape, 1)
        row = jax.lax.broadcasted_iota(jnp.int32, sq.shape, 0) + pl.program_id(0) * b_blk
        out_ref[...] = jnp.where((col == 0) & (row < n_valid), sq, 0.0)

    return kernel


def _pick_batch_block(b):
    if b >= 32:
        return 16
    if b >= 16:
        return 8
    return b                                   # single step; block == full array dims


# ---------------------------------------------------------------------------
# Wrapper: one pallas_call for the whole forward
# ---------------------------------------------------------------------------
@jax.jit
def metricgan_forward(params, y_mag, x_mag, weight_gen=1.0):
    B, hh, ww = y_mag.shape
    assert (hh, ww) == (H, W) and x_mag.shape == y_mag.shape

    b_blk = _pick_batch_block(B)
    n_blocks = -(-B // b_blk)
    b_pad = n_blocks * b_blk

    # Channels-last, fully flattened raw input (1x data; no im2col / transposes).
    # Lane index = (ih*W + iw)*CIN + cin, matching the row ordering of t1.
    xin = jnp.stack([y_mag, x_mag], axis=-1).reshape(B, IN_DIM).astype(jnp.float32)
    if b_pad != B:
        xin = jnp.pad(xin, ((0, b_pad - B), (0, 0)))   # padded rows are masked in-kernel

    resident = lambda i: (0, 0)                        # weights stay VMEM-resident
    kernel = _make_fused_kernel(B, b_blk)

    out = pl.pallas_call(
        kernel,
        out_shape=jax.ShapeDtypeStruct((b_pad, CP), jnp.float32),
        grid=(n_blocks,),
        in_specs=[
            pl.BlockSpec((b_blk, IN_DIM), lambda i: (i, 0)),   # per-block input
            pl.BlockSpec(params["t1"].shape, resident),
            pl.BlockSpec(params["b1"].shape, resident),
            pl.BlockSpec(params["a1"].shape, resident),
            pl.BlockSpec(params["t2"].shape, resident),
            pl.BlockSpec(params["b2"].shape, resident),
            pl.BlockSpec(params["a2"].shape, resident),
            pl.BlockSpec(params["fw1"].shape, resident),
            pl.BlockSpec(params["fb1"].shape, resident),
            pl.BlockSpec(params["fa1"].shape, resident),
            pl.BlockSpec(params["fw2"].shape, resident),
            pl.BlockSpec(params["fb2"].shape, resident),
        ],
        out_specs=pl.BlockSpec((b_blk, CP), lambda i: (i, 0)),
        compiler_params=pltpu.CompilerParams(
            dimension_semantics=("parallel",),        # batch blocks are independent (v7x 2 TCs)
            vmem_limit_bytes=32 * 1024 * 1024,        # ~0.8 MiB resident; ample v7x headroom
        ),
    )(xin,
      params["t1"], params["b1"], params["a1"],
      params["t2"], params["b2"], params["a2"],
      params["fw1"], params["fb1"], params["fa1"], params["fw2"], params["fb2"])

    # out is exactly zero except (valid row, lane 0): plain sum == sum of squared errors.
    return (jnp.sum(out) / B) * weight_gen


# ---------------------------------------------------------------------------
# Host-side construction of the folded conv matrices and synthetic parameters
# ---------------------------------------------------------------------------
def _conv_as_matrix(w, h_in, w_in, h_out, w_out, c_in, c_out):
    """Dense (h_in*w_in*c_in, h_out*w_out*c_out) matrix implementing a KxK,
    stride-2, pad-1 conv on a channels-last, spatially flattened input.
    Zero rows implement the implicit zero padding."""
    mat = np.zeros((h_in * w_in * c_in, h_out * w_out * c_out), np.float32)
    for oh in range(h_out):
        for ow in range(w_out):
            col = (oh * w_out + ow) * c_out
            for ki in range(K):
                for kj in range(K):
                    ih = STRIDE * oh + ki - PAD
                    iw = STRIDE * ow + kj - PAD
                    if 0 <= ih < h_in and 0 <= iw < w_in:
                        for ci in range(c_in):
                            row = (ih * w_in + iw) * c_in + ci
                            mat[row, col:col + c_out] += w[:, ci, ki, kj]
    return mat


def init_discriminator_params(key):
    ks = jax.random.split(key, 8)
    scale = 0.1
    # PyTorch-layout conv weights (C_out, C_in, K, K); PReLU alpha = 0.25 (default init).
    w1 = np.asarray(jax.random.normal(ks[0], (C1, CIN, K, K), jnp.float32)) * scale
    b1 = np.asarray(jax.random.normal(ks[1], (C1,), jnp.float32)) * 0.01
    w2 = np.asarray(jax.random.normal(ks[2], (C2, C1, K, K), jnp.float32)) * scale
    b2 = np.asarray(jax.random.normal(ks[3], (C2,), jnp.float32)) * 0.01
    fw1 = np.asarray(jax.random.normal(ks[4], (C2, C2), jnp.float32)) * scale
    fb1 = np.asarray(jax.random.normal(ks[5], (C2,), jnp.float32)) * 0.01
    fw2 = np.asarray(jax.random.normal(ks[6], (C2, 1), jnp.float32)) * scale
    fb2 = np.asarray(jax.random.normal(ks[7], (1,), jnp.float32)) * 0.01

    t1 = _conv_as_matrix(w1, H, W, H1, W1, CIN, C1)      # (512, 512)
    t2 = _conv_as_matrix(w2, H1, W1, H2, W2, C1, C2)     # (512, 256)

    a1 = np.full((C1,), 0.25, np.float32)
    a2 = np.full((C2,), 0.25, np.float32)

    # Head weights padded to 128 lanes.  Padded output lanes of fc1 are exactly 0
    # (zero weight columns, zero bias); padded input rows of fc2 are zero, and the
    # single real logit lives in column 0.
    fw1p = np.zeros((C2, CP), np.float32); fw1p[:, :C2] = fw1
    fb1p = np.zeros((1, CP), np.float32);  fb1p[0, :C2] = fb1
    fa1p = np.full((1, CP), 0.25, np.float32)
    fw2p = np.zeros((CP, CP), np.float32); fw2p[:C2, 0] = fw2[:, 0]
    fb2p = np.zeros((1, CP), np.float32);  fb2p[0, 0] = fb2[0]

    return dict(
        t1=jnp.asarray(t1, jnp.bfloat16),
        b1=jnp.asarray(np.tile(b1, H1 * W1)[None, :], jnp.float32),   # (1, 512) lane-tiled
        a1=jnp.asarray(np.tile(a1, H1 * W1)[None, :], jnp.float32),
        t2=jnp.asarray(t2, jnp.bfloat16),
        b2=jnp.asarray(np.tile(b2, H2 * W2)[None, :], jnp.float32),   # (1, 256) lane-tiled
        a2=jnp.asarray(np.tile(a2, H2 * W2)[None, :], jnp.float32),
        fw1=jnp.asarray(fw1p, jnp.bfloat16),    # (16, 128)
        fb1=jnp.asarray(fb1p, jnp.float32),
        fa1=jnp.asarray(fa1p, jnp.float32),
        fw2=jnp.asarray(fw2p, jnp.bfloat16),    # (128, 128)
        fb2=jnp.asarray(fb2p, jnp.float32),
    )


class MetricGANLossPallas:
    """Pallas re-implementation of MetricGAN_Loss.forward (generator loss)."""

    # TODO(synk): calculate_disc_loss needs the external PESQ metric (pesq/joblib or
    # torch_pesq); only the forward() generator path is implemented here.
    # TODO(synk): the discriminator is a synthetic stand-in (the PyTorch module takes
    # it as a constructor argument); the folded dense-conv formulation is sized for
    # these small 16x16 patches -- production-sized spectrograms would tile the
    # spatial dimension instead of folding it into the GEMM K/N dims.

    def __init__(self, params, weight_gen=1.0):
        self.params = params
        self.weight_gen = weight_gen

    def forward(self, x, y):
        # x, y are dicts with key 'magnitude': (B, F, T); discriminator(y_mag, x_mag).
        return metricgan_forward(self.params, y["magnitude"], x["magnitude"],
                                 self.weight_gen)

    __call__ = forward


if __name__ == "__main__":
    key = jax.random.PRNGKey(0)
    kx, ky, kp = jax.random.split(key, 3)
    B = 32                                     # -> 2 grid steps of 16 samples each
    x_mag = jnp.abs(jax.random.normal(kx, (B, H, W), jnp.float32))   # enhanced magnitude
    y_mag = jnp.abs(jax.random.normal(ky, (B, H, W), jnp.float32))   # clean magnitude
    params = init_discriminator_params(kp)

    loss_fn = MetricGANLossPallas(params, weight_gen=1.0)
    loss = loss_fn({"magnitude": x_mag}, {"magnitude": y_mag})
    jax.block_until_ready(loss)
    assert loss.shape == () and loss.dtype == jnp.float32
    assert bool(jnp.isfinite(loss))
    print("KERNEL_OK")
</pallas_src>

<mosaic_0001>
module attributes {stable_mosaic.version = 11 : i64} {
  func.func @kernel(%arg0: i32, %arg1: memref<16x512xf32, #tpu.memory_space<vmem>>, %arg2: memref<512x512xbf16, #tpu.memory_space<vmem>>, %arg3: memref<1x512xf32, #tpu.memory_space<vmem>>, %arg4: memref<1x512xf32, #tpu.memory_space<vmem>>, %arg5: memref<512x256xbf16, #tpu.memory_space<vmem>>, %arg6: memref<1x256xf32, #tpu.memory_space<vmem>>, %arg7: memref<1x256xf32, #tpu.memory_space<vmem>>, %arg8: memref<16x128xbf16, #tpu.memory_space<vmem>>, %arg9: memref<1x128xf32, #tpu.memory_space<vmem>>, %arg10: memref<1x128xf32, #tpu.memory_space<vmem>>, %arg11: memref<128x128xbf16, #tpu.memory_space<vmem>>, %arg12: memref<1x128xf32, #tpu.memory_space<vmem>>, %arg13: memref<16x128xf32, #tpu.memory_space<vmem>>) attributes {dimension_semantics = [#tpu.dimension_semantics<parallel>], iteration_bounds = array<i64: 2>, scalar_prefetch = 0 : i64, scratch_operands = 0 : i64, tpu.core_type = #tpu.core_type<tc>, window_params = [{transform_indices = @transform_0, window_bounds = array<i64: 16, 512>}, {pipeline_mode = #tpu.pipeline_mode<synchronous>, transform_indices = @transform_1, window_bounds = array<i64: 512, 512>}, {pipeline_mode = #tpu.pipeline_mode<synchronous>, transform_indices = @transform_2, window_bounds = array<i64: 1, 512>}, {pipeline_mode = #tpu.pipeline_mode<synchronous>, transform_indices = @transform_3, window_bounds = array<i64: 1, 512>}, {pipeline_mode = #tpu.pipeline_mode<synchronous>, transform_indices = @transform_4, window_bounds = array<i64: 512, 256>}, {pipeline_mode = #tpu.pipeline_mode<synchronous>, transform_indices = @transform_5, window_bounds = array<i64: 1, 256>}, {pipeline_mode = #tpu.pipeline_mode<synchronous>, transform_indices = @transform_6, window_bounds = array<i64: 1, 256>}, {pipeline_mode = #tpu.pipeline_mode<synchronous>, transform_indices = @transform_7, window_bounds = array<i64: 16, 128>}, {pipeline_mode = #tpu.pipeline_mode<synchronous>, transform_indices = @transform_8, window_bounds = array<i64: 1, 128>}, {pipeline_mode = #tpu.pipeline_mode<synchronous>, transform_indices = @transform_9, window_bounds = array<i64: 1, 128>}, {pipeline_mode = #tpu.pipeline_mode<synchronous>, transform_indices = @transform_10, window_bounds = array<i64: 128, 128>}, {pipeline_mode = #tpu.pipeline_mode<synchronous>, transform_indices = @transform_11, window_bounds = array<i64: 1, 128>}, {transform_indices = @transform_12, window_bounds = array<i64: 16, 128>}]} {
    %c0 = arith.constant 0 : index
    %c0_0 = arith.constant 0 : index
    %0 = vector.load %arg1[%c0, %c0_0] : memref<16x512xf32, #tpu.memory_space<vmem>>, vector<16x512xf32>
    %1 = arith.truncf %0 : vector<16x512xf32> to vector<16x512xbf16>
    %c0_1 = arith.constant 0 : index
    %c0_2 = arith.constant 0 : index
    %2 = vector.load %arg2[%c0_1, %c0_2] : memref<512x512xbf16, #tpu.memory_space<vmem>>, vector<512x512xbf16>
    %cst = arith.constant dense<0.000000e+00> : vector<16x512xf32>
    %3 = tpu.matmul %1, %2, %cst {dimension_numbers = #tpu.dot_dimension_numbers<[1], [0], [0], [1], [0, 0, 1, 1], [], []>} : vector<16x512xbf16>, vector<512x512xbf16>, vector<16x512xf32> -> vector<16x512xf32>
    %c0_3 = arith.constant 0 : index
    %c0_4 = arith.constant 0 : index
    %4 = vector.load %arg3[%c0_3, %c0_4] : memref<1x512xf32, #tpu.memory_space<vmem>>, vector<1x512xf32>
    %5 = vector.broadcast %4 : vector<1x512xf32> to vector<16x512xf32>
    %6 = arith.addf %3, %5 : vector<16x512xf32>
    %cst_5 = arith.constant 0.000000e+00 : f32
    %7 = vector.broadcast %cst_5 : f32 to vector<16x512xf32>
    %8 = arith.cmpf oge, %6, %7 : vector<16x512xf32>
    %c0_6 = arith.constant 0 : index
    %c0_7 = arith.constant 0 : index
    %9 = vector.load %arg4[%c0_6, %c0_7] : memref<1x512xf32, #tpu.memory_space<vmem>>, vector<1x512xf32>
    %10 = vector.broadcast %9 : vector<1x512xf32> to vector<16x512xf32>
    %11 = arith.mulf %10, %6 : vector<16x512xf32>
    %12 = arith.select %8, %6, %11 : vector<16x512xi1>, vector<16x512xf32>
    %13 = arith.truncf %12 : vector<16x512xf32> to vector<16x512xbf16>
    %c0_8 = arith.constant 0 : index
    %c0_9 = arith.constant 0 : index
    %14 = vector.load %arg5[%c0_8, %c0_9] : memref<512x256xbf16, #tpu.memory_space<vmem>>, vector<512x256xbf16>
    %cst_10 = arith.constant dense<0.000000e+00> : vector<16x256xf32>
    %15 = tpu.matmul %13, %14, %cst_10 {dimension_numbers = #tpu.dot_dimension_numbers<[1], [0], [0], [1], [0, 0, 1, 1], [], []>} : vector<16x512xbf16>, vector<512x256xbf16>, vector<16x256xf32> -> vector<16x256xf32>
    %c0_11 = arith.constant 0 : index
    %c0_12 = arith.constant 0 : index
    %16 = vector.load %arg6[%c0_11, %c0_12] : memref<1x256xf32, #tpu.memory_space<vmem>>, vector<1x256xf32>
    %17 = vector.broadcast %16 : vector<1x256xf32> to vector<16x256xf32>
    %18 = arith.addf %15, %17 : vector<16x256xf32>
    %cst_13 = arith.constant 0.000000e+00 : f32
    %19 = vector.broadcast %cst_13 : f32 to vector<16x256xf32>
    %20 = arith.cmpf oge, %18, %19 : vector<16x256xf32>
    %c0_14 = arith.constant 0 : index
    %c0_15 = arith.constant 0 : index
    %21 = vector.load %arg7[%c0_14, %c0_15] : memref<1x256xf32, #tpu.memory_space<vmem>>, vector<1x256xf32>
    %22 = vector.broadcast %21 : vector<1x256xf32> to vector<16x256xf32>
    %23 = arith.mulf %22, %18 : vector<16x256xf32>
    %24 = arith.select %20, %18, %23 : vector<16x256xi1>, vector<16x256xf32>
    %25 = vector.extract_strided_slice %24 {offsets = [0, 0], sizes = [16, 128], strides = [1, 1]} : vector<16x256xf32> to vector<16x128xf32>
    %26 = vector.extract_strided_slice %24 {offsets = [0, 128], sizes = [16, 128], strides = [1, 1]} : vector<16x256xf32> to vector<16x128xf32>
    %27 = arith.maximumf %25, %26 : vector<16x128xf32>
    %28 = vector.extract_strided_slice %27 {offsets = [0, 0], sizes = [16, 64], strides = [1, 1]} : vector<16x128xf32> to vector<16x64xf32>
    %29 = vector.extract_strided_slice %27 {offsets = [0, 64], sizes = [16, 64], strides = [1, 1]} : vector<16x128xf32> to vector<16x64xf32>
    %30 = arith.maximumf %28, %29 : vector<16x64xf32>
    %31 = vector.extract_strided_slice %30 {offsets = [0, 0], sizes = [16, 32], strides = [1, 1]} : vector<16x64xf32> to vector<16x32xf32>
    %32 = vector.extract_strided_slice %30 {offsets = [0, 32], sizes = [16, 32], strides = [1, 1]} : vector<16x64xf32> to vector<16x32xf32>
    %33 = arith.maximumf %31, %32 : vector<16x32xf32>
    %34 = vector.extract_strided_slice %33 {offsets = [0, 0], sizes = [16, 16], strides = [1, 1]} : vector<16x32xf32> to vector<16x16xf32>
    %35 = vector.extract_strided_slice %33 {offsets = [0, 16], sizes = [16, 16], strides = [1, 1]} : vector<16x32xf32> to vector<16x16xf32>
    %36 = arith.maximumf %34, %35 : vector<16x16xf32>
    %37 = arith.truncf %36 : vector<16x16xf32> to vector<16x16xbf16>
    %c0_16 = arith.constant 0 : index
    %c0_17 = arith.constant 0 : index
    %38 = vector.load %arg8[%c0_16, %c0_17] : memref<16x128xbf16, #tpu.memory_space<vmem>>, vector<16x128xbf16>
    %cst_18 = arith.constant dense<0.000000e+00> : vector<16x128xf32>
    %39 = tpu.matmul %37, %38, %cst_18 {dimension_numbers = #tpu.dot_dimension_numbers<[1], [0], [0], [1], [0, 0, 1, 1], [], []>} : vector<16x16xbf16>, vector<16x128xbf16>, vector<16x128xf32> -> vector<16x128xf32>
    %c0_19 = arith.constant 0 : index
    %c0_20 = arith.constant 0 : index
    %40 = vector.load %arg9[%c0_19, %c0_20] : memref<1x128xf32, #tpu.memory_space<vmem>>, vector<1x128xf32>
    %41 = vector.broadcast %40 : vector<1x128xf32> to vector<16x128xf32>
    %42 = arith.addf %39, %41 : vector<16x128xf32>
    %cst_21 = arith.constant 0.000000e+00 : f32
    %43 = vector.broadcast %cst_21 : f32 to vector<16x128xf32>
    %44 = arith.cmpf oge, %42, %43 : vector<16x128xf32>
    %c0_22 = arith.constant 0 : index
    %c0_23 = arith.constant 0 : index
    %45 = vector.load %arg10[%c0_22, %c0_23] : memref<1x128xf32, #tpu.memory_space<vmem>>, vector<1x128xf32>
    %46 = vector.broadcast %45 : vector<1x128xf32> to vector<16x128xf32>
    %47 = arith.mulf %46, %42 : vector<16x128xf32>
    %48 = arith.select %44, %42, %47 : vector<16x128xi1>, vector<16x128xf32>
    %49 = arith.truncf %48 : vector<16x128xf32> to vector<16x128xbf16>
    %c0_24 = arith.constant 0 : index
    %c0_25 = arith.constant 0 : index
    %50 = vector.load %arg11[%c0_24, %c0_25] : memref<128x128xbf16, #tpu.memory_space<vmem>>, vector<128x128xbf16>
    %cst_26 = arith.constant dense<0.000000e+00> : vector<16x128xf32>
    %51 = tpu.matmul %49, %50, %cst_26 {dimension_numbers = #tpu.dot_dimension_numbers<[1], [0], [0], [1], [0, 0, 1, 1], [], []>} : vector<16x128xbf16>, vector<128x128xbf16>, vector<16x128xf32> -> vector<16x128xf32>
    %c0_27 = arith.constant 0 : index
    %c0_28 = arith.constant 0 : index
    %52 = vector.load %arg12[%c0_27, %c0_28] : memref<1x128xf32, #tpu.memory_space<vmem>>, vector<1x128xf32>
    %53 = vector.broadcast %52 : vector<1x128xf32> to vector<16x128xf32>
    %54 = arith.addf %51, %53 : vector<16x128xf32>
    %cst_29 = arith.constant 0.000000e+00 : f32
    %55 = vector.broadcast %cst_29 : f32 to vector<16x128xf32>
    %56 = arith.subf %55, %54 : vector<16x128xf32>
    %57 = math.exp %56 : vector<16x128xf32>
    %cst_30 = arith.constant 1.000000e+00 : f32
    %58 = vector.broadcast %cst_30 : f32 to vector<16x128xf32>
    %59 = arith.addf %58, %57 : vector<16x128xf32>
    %cst_31 = arith.constant 1.000000e+00 : f32
    %60 = vector.broadcast %cst_31 : f32 to vector<16x128xf32>
    %61 = arith.divf %60, %59 : vector<16x128xf32>
    %cst_32 = arith.constant 1.000000e+00 : f32
    %62 = vector.broadcast %cst_32 : f32 to vector<16x128xf32>
    %63 = arith.subf %61, %62 : vector<16x128xf32>
    %64 = arith.mulf %63, %63 : vector<16x128xf32>
    %65 = tpu.iota {dimensions = array<i32: 1>} : vector<16x128xi32>
    %66 = tpu.iota {dimensions = array<i32: 0>} : vector<16x128xi32>
    %c16_i32 = arith.constant 16 : i32
    %67 = arith.muli %arg0, %c16_i32 : i32
    %68 = vector.broadcast %67 : i32 to vector<16x128xi32>
    %69 = arith.addi %66, %68 : vector<16x128xi32>
    %c0_i32 = arith.constant 0 : i32
    %70 = vector.broadcast %c0_i32 : i32 to vector<16x128xi32>
    %71 = arith.cmpi eq, %65, %70 : vector<16x128xi32>
    %c32_i32 = arith.constant 32 : i32
    %72 = vector.broadcast %c32_i32 : i32 to vector<16x128xi32>
    %73 = arith.cmpi slt, %69, %72 : vector<16x128xi32>
    %74 = arith.andi %71, %73 : vector<16x128xi1>
    %cst_33 = arith.constant 0.000000e+00 : f32
    %75 = vector.broadcast %cst_33 : f32 to vector<16x128xf32>
    %76 = arith.select %74, %64, %75 : vector<16x128xi1>, vector<16x128xf32>
    %c0_34 = arith.constant 0 : index
    %c0_35 = arith.constant 0 : index
    %77 = vector.load %arg13[%c0_34, %c0_35] : memref<16x128xf32, #tpu.memory_space<vmem>>, vector<16x128xf32>
    tpu.vector_store %arg13[%c0_34, %c0_35], %76 {strides = array<i32>} : memref<16x128xf32, #tpu.memory_space<vmem>>, vector<16x128xf32>,
    return
  }
  func.func @transform_0(%arg0: i32) -> (i32, i32) {
    %c0_i32 = arith.constant 0 : i32
    %c0_i32_0 = arith.constant 0 : i32
    return %arg0, %c0_i32 : i32, i32
  }
  func.func @transform_1(%arg0: i32) -> (i32, i32) {
    %c0_i32 = arith.constant 0 : i32
    %c0_i32_0 = arith.constant 0 : i32
    %c0_i32_1 = arith.constant 0 : i32
    return %c0_i32, %c0_i32_0 : i32, i32
  }
  func.func @transform_2(%arg0: i32) -> (i32, i32) {
    %c0_i32 = arith.constant 0 : i32
    %c0_i32_0 = arith.constant 0 : i32
    %c0_i32_1 = arith.constant 0 : i32
    return %c0_i32, %c0_i32_0 : i32, i32
  }
  func.func @transform_3(%arg0: i32) -> (i32, i32) {
    %c0_i32 = arith.constant 0 : i32
    %c0_i32_0 = arith.constant 0 : i32
    %c0_i32_1 = arith.constant 0 : i32
    return %c0_i32, %c0_i32_0 : i32, i32
  }
  func.func @transform_4(%arg0: i32) -> (i32, i32) {
    %c0_i32 = arith.constant 0 : i32
    %c0_i32_0 = arith.constant 0 : i32
    %c0_i32_1 = arith.constant 0 : i32
    return %c0_i32, %c0_i32_0 : i32, i32
  }
  func.func @transform_5(%arg0: i32) -> (i32, i32) {
    %c0_i32 = arith.constant 0 : i32
    %c0_i32_0 = arith.constant 0 : i32
    %c0_i32_1 = arith.constant 0 : i32
    return %c0_i32, %c0_i32_0 : i32, i32
  }
  func.func @transform_6(%arg0: i32) -> (i32, i32) {
    %c0_i32 = arith.constant 0 : i32
    %c0_i32_0 = arith.constant 0 : i32
    %c0_i32_1 = arith.constant 0 : i32
    return %c0_i32, %c0_i32_0 : i32, i32
  }
  func.func @transform_7(%arg0: i32) -> (i32, i32) {
    %c0_i32 = arith.constant 0 : i32
    %c0_i32_0 = arith.constant 0 : i32
    %c0_i32_1 = arith.constant 0 : i32
    return %c0_i32, %c0_i32_0 : i32, i32
  }
  func.func @transform_8(%arg0: i32) -> (i32, i32) {
    %c0_i32 = arith.constant 0 : i32
    %c0_i32_0 = arith.constant 0 : i32
    %c0_i32_1 = arith.constant 0 : i32
    return %c0_i32, %c0_i32_0 : i32, i32
  }
  func.func @transform_9(%arg0: i32) -> (i32, i32) {
    %c0_i32 = arith.constant 0 : i32
    %c0_i32_0 = arith.constant 0 : i32
    %c0_i32_1 = arith.constant 0 : i32
    return %c0_i32, %c0_i32_0 : i32, i32
  }
  func.func @transform_10(%arg0: i32) -> (i32, i32) {
    %c0_i32 = arith.constant 0 : i32
    %c0_i32_0 = arith.constant 0 : i32
    %c0_i32_1 = arith.constant 0 : i32
    return %c0_i32, %c0_i32_0 : i32, i32
  }
  func.func @transform_11(%arg0: i32) -> (i32, i32) {
    %c0_i32 = arith.constant 0 : i32
    %c0_i32_0 = arith.constant 0 : i32
    %c0_i32_1 = arith.constant 0 : i32
    return %c0_i32, %c0_i32_0 : i32, i32
  }
  func.func @transform_12(%arg0: i32) -> (i32, i32) {
    %c0_i32 = arith.constant 0 : i32
    %c0_i32_0 = arith.constant 0 : i32
    return %arg0, %c0_i32 : i32, i32
  }
}

</mosaic_0001>

<bundles_post_ra>
// kernel: metricgan_forward.1
= control target key start
LH: loop header
LB: loop body
LE: loop exit
PB: predicated region body
PF: predicated region fallthrough
CT: control target
= control target key end

     0   :  { %s2929_s21 = smov 0   ;;  %s3618_s0 = inlined_call_operand.vmem [shape: f32[32,512], index: 0, kind: input, shape index: {}]   ;;  %s3619_s1 = inlined_call_operand.vmem [shape: bf16[512,512], index: 1, kind: input, shape index: {}]   ;;  %s3620_s2 = inlined_call_operand.vmem [shape: f32[1,512], index: 2, kind: input, shape index: {}]   ;;  %s3621_s3 = inlined_call_operand.vmem [shape: f32[1,512], index: 3, kind: input, shape index: {}]   ;;  %s3622_s4 = inlined_call_operand.vmem [shape: bf16[512,256], index: 4, kind: input, shape index: {}]   ;;  %s3623_s5 = inlined_call_operand.vmem [shape: f32[1,256], index: 5, kind: input, shape index: {}]   ;;  %s3624_s6 = inlined_call_operand.vmem [shape: f32[1,256], index: 6, kind: input, shape index: {}]   ;;  %s3625_s7 = inlined_call_operand.vmem [shape: bf16[16,128], index: 7, kind: input, shape index: {}]   ;;  %s3626_s8 = inlined_call_operand.vmem [shape: f32[1,128], index: 8, kind: input, shape index: {}]   ;;  %s3627_s9 = inlined_call_operand.vmem [shape: f32[1,128], index: 9, kind: input, shape index: {}]   ;;  %s3628_s10 = inlined_call_operand.vmem [shape: bf16[128,128], index: 10, kind: input, shape index: {}]   ;;  %s3629_s11 = inlined_call_operand.vmem [shape: f32[1,128], index: 11, kind: input, shape index: {}]   ;;  %s3630_s12 = inlined_call_operand.vmem [shape: f32[32,128], index: 12, kind: output, shape index: {}]  }
   0x1 LB: > { %s2260_s22 = sadd.s32 4294967295, %s2857_s21   ;;  %p2264_p0 = scmp.ge.s32.totalorder %s2857_s21, 1  ;;  %s2857_s21 = sphi %s2929_s21, %s22_s21  }
   0x2   : > { %p364_p1 = scmp.lt.s32.totalorder %s2857_s21, 3 }
   0x4   : > { %p365_p2 = pnand %p2264_p0, %p364_p1 }
   0x5   : > { %s2265_s17 = sshll.u32 (!%p365_p2), %s2260_s22, 1  ;;  %s2859_s28 = smov (!%p365_p2), 64  }
   0x6   : > { %368 = sbr.rel (%p365_p2) target bundleno = 1363 (0x553), region = 68  ;;  %p408_p3 = scmp.lt.s32.totalorder (!%p365_p2), %s2265_s17, 3 }
   0x7   : > { %s2861_s13 = smov (!%p365_p2), 96   ;;  %s2863_s24 = smov (!%p365_p2), 112  }
   0xb   : > { %v2546_v0 = vld [vmem:[%s3619_s1 + $0xe4] ss:$16 sps:$4 sm:$0xff]   ;;  %v2550_v2 = vld [vmem:[%s3619_s1 + $0xe0] ss:$16 sps:$4 sm:$0xff]   ;;  %s3632_s17 = smov (!%p408_p3, %s2265_s17), 3  ;;  %vm2862_vm12 = vmmov 0  }
   0xc   : > { %v2548_v1 = vld [vmem:[%s3619_s1 + $0x2e4] ss:$16 sps:$4 sm:$0xff]   ;;  %1223 = vmatprep.subr.bf16.mxu0 %v2546_v0  ;;  %v2551_v3 = vld [vmem:[%s3619_s1 + $0x2e0] ss:$16 sps:$4 sm:$0xff]   ;;  %s2480_s27 = sshll.u32 %s3632_s17, 5  ;;  %vm1999_vm13 = vcmask 130048  }
   0xd   : > { %1266 = vmatprep.subr.bf16.mxu1 %v2548_v1  ;;  %v2552_v4 = vld [vmem:[%s3619_s1 + $0xc4] ss:$16 sps:$4 sm:$0xff]   ;;  %1224 = vmatpush1.bf16.msra.mxu0 %v2550_v2  ;;  %v2556_v6 = vld [vmem:[%s3619_s1 + $0xc0] ss:$16 sps:$4 sm:$0xff]   ;;  %s3077_s19 = scalar_lea.vmem %s3618_s0, %s2480_s27  ;;  %s2269_s26 = sshll.u32 %s3632_s17, 3 }
   0xe   : > { %1267 = vmatpush1.bf16.msra.mxu1 %v2551_v3  ;;  %v2554_v5 = vld [vmem:[%s3619_s1 + $0x2c4] ss:$16 sps:$4 sm:$0xff]   ;;  %1225 = vmatprep.subr.bf16.mxu0 %v2552_v4  ;;  %v2557_v7 = vld [vmem:[%s3619_s1 + $0x2c0] ss:$16 sps:$4 sm:$0xff]   ;;  %v422_v46 = vld [vmem:[%s3077_s19 + $0x8] sm:$0xff] }
   0xf   : > { %1268 = vmatprep.subr.bf16.mxu1 %v2554_v5  ;;  %v2558_v8 = vld [vmem:[%s3619_s1 + $0xa4] ss:$16 sps:$4 sm:$0xff]   ;;  %v2562_v10 = vld [vmem:[%s3619_s1 + $0xa0] ss:$16 sps:$4 sm:$0xff]   ;;  %v426_v47 = vld [vmem:[%s3077_s19 + $0x28] sm:$0xff] }
  0x10   : > { %v2560_v9 = vld [vmem:[%s3619_s1 + $0x2a4] ss:$16 sps:$4 sm:$0xff]   ;;  %v2563_v11 = vld [vmem:[%s3619_s1 + $0x2a0] ss:$16 sps:$4 sm:$0xff]   ;;  %v424_v48 = vld [vmem:[%s3077_s19 + $0x18] sm:$0xff]  ;;  %v430_v53 = vpack.c.bf16 %v426_v47, %v422_v46 }
  0x11   : > { %1226 = vmatpush1.bf16.msra.mxu0 %v2556_v6  ;;  %v2564_v12 = vld [vmem:[%s3619_s1 + $0x84] ss:$16 sps:$4 sm:$0xff]   ;;  %v2568_v14 = vld [vmem:[%s3619_s1 + $0x80] ss:$16 sps:$4 sm:$0xff]   ;;  %v428_v49 = vld [vmem:[%s3077_s19 + $0x38] sm:$0xff] }
  0x12   : > { %1269 = vmatpush1.bf16.msra.mxu1 %v2557_v7  ;;  %1227 = vmatprep.subr.bf16.mxu0 %v2558_v8  ;;  %v2566_v13 = vld [vmem:[%s3619_s1 + $0x284] ss:$16 sps:$4 sm:$0xff]   ;;  %v2569_v15 = vld [vmem:[%s3619_s1 + $0x280] ss:$16 sps:$4 sm:$0xff]   ;;  %v432_v54 = vpack.c.bf16 %v428_v49, %v424_v48  ;;  %v2690_v46 = vld [vmem:[%s3619_s1 + $0x1e8] ss:$16 sps:$4 sm:$0xff]  }
  0x13   : > { %1270 = vmatprep.subr.bf16.mxu1 %v2560_v9  ;;  %v2570_v16 = vld [vmem:[%s3619_s1 + $0x64] ss:$16 sps:$4 sm:$0xff]   ;;  %v2574_v18 = vld [vmem:[%s3619_s1 + $0x60] ss:$16 sps:$4 sm:$0xff]   ;;  %1255 = vmatprep.mubr.bf16.mxu0 %v430_v53  ;;  %v2693_v47 = vld [vmem:[%s3619_s1 + $0x3e8] ss:$16 sps:$4 sm:$0xff]  }
  0x14   : > { %v2572_v17 = vld [vmem:[%s3619_s1 + $0x264] ss:$16 sps:$4 sm:$0xff]   ;;  %v2575_v19 = vld [vmem:[%s3619_s1 + $0x260] ss:$16 sps:$4 sm:$0xff]   ;;  %1298 = vmatprep.mubr.bf16.mxu1 %v432_v54  ;;  %v2698_v48 = vld [vmem:[%s3619_s1 + $0x1cc] ss:$16 sps:$4 sm:$0xff]  }
  0x15   : > { %1228 = vmatpush1.bf16.msra.mxu0 %v2562_v10  ;;  %v2576_v20 = vld [vmem:[%s3619_s1 + $0x44] ss:$16 sps:$4 sm:$0xff]   ;;  %v2580_v22 = vld [vmem:[%s3619_s1 + $0x40] ss:$16 sps:$4 sm:$0xff]   ;;  %v2644_v10 = vld [vmem:[%s3619_s1 + $0xec] ss:$16 sps:$4 sm:$0xff]  }
  0x16   : > { %1271 = vmatpush1.bf16.msra.mxu1 %v2563_v11  ;;  %1229 = vmatprep.subr.bf16.mxu0 %v2564_v12  ;;  %v2578_v21 = vld [vmem:[%s3619_s1 + $0x244] ss:$16 sps:$4 sm:$0xff]   ;;  %v2581_v23 = vld [vmem:[%s3619_s1 + $0x240] ss:$16 sps:$4 sm:$0xff]   ;;  %v2647_v11 = vld [vmem:[%s3619_s1 + $0x2ec] ss:$16 sps:$4 sm:$0xff]  }
  0x17   : > { %1272 = vmatprep.subr.bf16.mxu1 %v2566_v13  ;;  %v2582_v24 = vld [vmem:[%s3619_s1 + $0x24] ss:$16 sps:$4 sm:$0xff]   ;;  %v2586_v26 = vld [vmem:[%s3619_s1 + $0x20] ss:$16 sps:$4 sm:$0xff]   ;;  %v2701_v49 = vld [vmem:[%s3619_s1 + $0x3cc] ss:$16 sps:$4 sm:$0xff]  }
  0x18   : > { %v2584_v25 = vld [vmem:[%s3619_s1 + $0x224] ss:$16 sps:$4 sm:$0xff]   ;;  %v2587_v27 = vld [vmem:[%s3619_s1 + $0x220] ss:$16 sps:$4 sm:$0xff]  }
  0x19   : > { %1230 = vmatpush1.bf16.msra.mxu0 %v2568_v14  ;;  %v2588_v28 = vld [vmem:[%s3619_s1 + $0x4] ss:$16 sps:$4 sm:$0xff]   ;;  %v2592_v30 = vld [vmem:[%s3619_s1] ss:$16 sps:$4 sm:$0xff]   ;;  %v2642_v14 = vld [vmem:[%s3619_s1 + $0xe8] ss:$16 sps:$4 sm:$0xff]  }
  0x1a   : > { %1273 = vmatpush1.bf16.msra.mxu1 %v2569_v15  ;;  %1231 = vmatprep.subr.bf16.mxu0 %v2570_v16  ;;  %v2590_v29 = vld [vmem:[%s3619_s1 + $0x204] ss:$16 sps:$4 sm:$0xff]   ;;  %v2593_v31 = vld [vmem:[%s3619_s1 + $0x200] ss:$16 sps:$4 sm:$0xff]   ;;  %v2645_v15 = vld [vmem:[%s3619_s1 + $0x2e8] ss:$16 sps:$4 sm:$0xff]  }
  0x1b   : > { %1274 = vmatprep.subr.bf16.mxu1 %v2572_v17  ;;  %v2594_v32 = vld [vmem:[%s3619_s1 + $0x1e4] ss:$16 sps:$4 sm:$0xff]   ;;  %v2598_v34 = vld [vmem:[%s3619_s1 + $0x1e0] ss:$16 sps:$4 sm:$0xff]   ;;  %v2650_v16 = vld [vmem:[%s3619_s1 + $0xcc] ss:$16 sps:$4 sm:$0xff]  }
  0x1c   : > { %v2596_v33 = vld [vmem:[%s3619_s1 + $0x3e4] ss:$16 sps:$4 sm:$0xff]   ;;  %v2599_v35 = vld [vmem:[%s3619_s1 + $0x3e0] ss:$16 sps:$4 sm:$0xff]   ;;  %v2653_v17 = vld [vmem:[%s3619_s1 + $0x2cc] ss:$16 sps:$4 sm:$0xff]  }
  0x1d   : > { %1232 = vmatpush1.bf16.msra.mxu0 %v2574_v18  ;;  %v2600_v36 = vld [vmem:[%s3619_s1 + $0x1c4] ss:$16 sps:$4 sm:$0xff]   ;;  %v2604_v38 = vld [vmem:[%s3619_s1 + $0x1c0] ss:$16 sps:$4 sm:$0xff]   ;;  %v2648_v18 = vld [vmem:[%s3619_s1 + $0xc8] ss:$16 sps:$4 sm:$0xff]  }
  0x1e   : > { %1275 = vmatpush1.bf16.msra.mxu1 %v2575_v19  ;;  %1233 = vmatprep.subr.bf16.mxu0 %v2576_v20  ;;  %v2602_v37 = vld [vmem:[%s3619_s1 + $0x3c4] ss:$16 sps:$4 sm:$0xff]   ;;  %v2605_v39 = vld [vmem:[%s3619_s1 + $0x3c0] ss:$16 sps:$4 sm:$0xff]   ;;  %v2651_v19 = vld [vmem:[%s3619_s1 + $0x2c8] ss:$16 sps:$4 sm:$0xff]  }
  0x1f   : > { %1276 = vmatprep.subr.bf16.mxu1 %v2578_v21  ;;  %v2606_v40 = vld [vmem:[%s3619_s1 + $0x1a4] ss:$16 sps:$4 sm:$0xff]   ;;  %v2610_v42 = vld [vmem:[%s3619_s1 + $0x1a0] ss:$16 sps:$4 sm:$0xff]   ;;  %v2656_v20 = vld [vmem:[%s3619_s1 + $0xac] ss:$16 sps:$4 sm:$0xff]  }
  0x20   : > { %v2608_v41 = vld [vmem:[%s3619_s1 + $0x3a4] ss:$16 sps:$4 sm:$0xff]   ;;  %v2611_v43 = vld [vmem:[%s3619_s1 + $0x3a0] ss:$16 sps:$4 sm:$0xff]   ;;  %v2659_v21 = vld [vmem:[%s3619_s1 + $0x2ac] ss:$16 sps:$4 sm:$0xff]  }
  0x21   : > { %1234 = vmatpush1.bf16.msra.mxu0 %v2580_v22  ;;  %v2612_v44 = vld [vmem:[%s3619_s1 + $0x184] ss:$16 sps:$4 sm:$0xff]   ;;  %v2616_v50 = vld [vmem:[%s3619_s1 + $0x180] ss:$16 sps:$4 sm:$0xff]   ;;  %v2654_v22 = vld [vmem:[%s3619_s1 + $0xa8] ss:$16 sps:$4 sm:$0xff]  }
  0x22   : > { %1277 = vmatpush1.bf16.msra.mxu1 %v2581_v23  ;;  %1235 = vmatprep.subr.bf16.mxu0 %v2582_v24  ;;  %v2614_v45 = vld [vmem:[%s3619_s1 + $0x384] ss:$16 sps:$4 sm:$0xff]   ;;  %v2617_v51 = vld [vmem:[%s3619_s1 + $0x380] ss:$16 sps:$4 sm:$0xff]   ;;  %v2657_v23 = vld [vmem:[%s3619_s1 + $0x2a8] ss:$16 sps:$4 sm:$0xff]  }
  0x23   : > { %1278 = vmatprep.subr.bf16.mxu1 %v2584_v25  ;;  %v2618_v52 = vld [vmem:[%s3619_s1 + $0x164] ss:$16 sps:$4 sm:$0xff]   ;;  %v2622_v56 = vld [vmem:[%s3619_s1 + $0x160] ss:$16 sps:$4 sm:$0xff]   ;;  %v2662_v24 = vld [vmem:[%s3619_s1 + $0x8c] ss:$16 sps:$4 sm:$0xff]  }
  0x24   : > { %v2620_v55 = vld [vmem:[%s3619_s1 + $0x364] ss:$16 sps:$4 sm:$0xff]   ;;  %v2623_v57 = vld [vmem:[%s3619_s1 + $0x360] ss:$16 sps:$4 sm:$0xff]   ;;  %v2665_v25 = vld [vmem:[%s3619_s1 + $0x28c] ss:$16 sps:$4 sm:$0xff]  }
  0x25   : > { %1236 = vmatpush1.bf16.msra.mxu0 %v2586_v26  ;;  %v2624_v58 = vld [vmem:[%s3619_s1 + $0x144] ss:$16 sps:$4 sm:$0xff]   ;;  %v2628_v60 = vld [vmem:[%s3619_s1 + $0x140] ss:$16 sps:$4 sm:$0xff]   ;;  %v2660_v26 = vld [vmem:[%s3619_s1 + $0x88] ss:$16 sps:$4 sm:$0xff]  }
  0x26   : > { %1279 = vmatpush1.bf16.msra.mxu1 %v2587_v27  ;;  %1237 = vmatprep.subr.bf16.mxu0 %v2588_v28  ;;  %v2626_v59 = vld [vmem:[%s3619_s1 + $0x344] ss:$16 sps:$4 sm:$0xff]   ;;  %v2629_v61 = vld [vmem:[%s3619_s1 + $0x340] ss:$16 sps:$4 sm:$0xff]   ;;  %v2663_v27 = vld [vmem:[%s3619_s1 + $0x288] ss:$16 sps:$4 sm:$0xff]  }
  0x27   : > { %1280 = vmatprep.subr.bf16.mxu1 %v2590_v29  ;;  %v2630_v62 = vld [vmem:[%s3619_s1 + $0x124] ss:$16 sps:$4 sm:$0xff]   ;;  %v2634_v0 = vld [vmem:[%s3619_s1 + $0x120] ss:$16 sps:$4 sm:$0xff]   ;;  %v2668_v28 = vld [vmem:[%s3619_s1 + $0x6c] ss:$16 sps:$4 sm:$0xff]  }
  0x28   : > { %v2632_v63 = vld [vmem:[%s3619_s1 + $0x324] ss:$16 sps:$4 sm:$0xff]   ;;  %v2635_v1 = vld [vmem:[%s3619_s1 + $0x320] ss:$16 sps:$4 sm:$0xff]   ;;  %v2671_v29 = vld [vmem:[%s3619_s1 + $0x26c] ss:$16 sps:$4 sm:$0xff]  }
  0x29   : > { %1238 = vmatpush1.bf16.msra.mxu0 %v2592_v30  ;;  %v2636_v2 = vld [vmem:[%s3619_s1 + $0x104] ss:$16 sps:$4 sm:$0xff]   ;;  %v2640_v4 = vld [vmem:[%s3619_s1 + $0x100] ss:$16 sps:$4 sm:$0xff]   ;;  %v2666_v30 = vld [vmem:[%s3619_s1 + $0x68] ss:$16 sps:$4 sm:$0xff]  }
  0x2a   : > { %1281 = vmatpush1.bf16.msra.mxu1 %v2593_v31  ;;  %1239 = vmatprep.subr.bf16.mxu0 %v2594_v32  ;;  %v2638_v3 = vld [vmem:[%s3619_s1 + $0x304] ss:$16 sps:$4 sm:$0xff]   ;;  %v2641_v5 = vld [vmem:[%s3619_s1 + $0x300] ss:$16 sps:$4 sm:$0xff]   ;;  %v2669_v31 = vld [vmem:[%s3619_s1 + $0x268] ss:$16 sps:$4 sm:$0xff]  }
  0x2b   : > { %1282 = vmatprep.subr.bf16.mxu1 %v2596_v33  ;;  %v421_v6 = vld [vmem:[%s3077_s19] sm:$0xff]  ;;  %v423_v8 = vld [vmem:[%s3077_s19 + $0x10] sm:$0xff]  ;;  %v2674_v32 = vld [vmem:[%s3619_s1 + $0x4c] ss:$16 sps:$4 sm:$0xff]  }
  0x2c   : > { %v425_v7 = vld [vmem:[%s3077_s19 + $0x20] sm:$0xff]  ;;  %v427_v9 = vld [vmem:[%s3077_s19 + $0x30] sm:$0xff]  ;;  %v2677_v33 = vld [vmem:[%s3619_s1 + $0x24c] ss:$16 sps:$4 sm:$0xff]   ;;  %s2477_s19 = sshll.u32 %s2260_s22, 4  ;;  %s418_s22 = scalar_lea.vmem %s3630_s12, %s2269_s26 }
  0x2d   : > { %1240 = vmatpush2.bf16.msra.mxu0 %v2598_v34  ;;  %v3153_v12 = vpack.c.bf16 %v425_v7, %v421_v6  ;;  %v3155_v13 = vpack.c.bf16 %v427_v9, %v423_v8  ;;  %v2672_v34 = vld [vmem:[%s3619_s1 + $0x48] ss:$16 sps:$4 sm:$0xff]   ;;  %v2734_v8 = vld [vmem:[%s3619_s1 + $0x10c] ss:$16 sps:$4 sm:$0xff]  }
  0x2e   : > { %1283 = vmatpush2.bf16.msra.mxu1 %v2599_v35  ;;  %1241 = vmatprep.subr.bf16.mxu0 %v2600_v36  ;;  %v2675_v35 = vld [vmem:[%s3619_s1 + $0x248] ss:$16 sps:$4 sm:$0xff]   ;;  %v2680_v36 = vld [vmem:[%s3619_s1 + $0x2c] ss:$16 sps:$4 sm:$0xff]  }
  0x2f   : > { %1284 = vmatprep.subr.bf16.mxu1 %v2602_v37  ;;  %v2683_v37 = vld [vmem:[%s3619_s1 + $0x22c] ss:$16 sps:$4 sm:$0xff]   ;;  %v2726_v6 = vld [vmem:[%s3619_s1 + $0x128] ss:$16 sps:$4 sm:$0xff]  }
  0x30   : > { %v2729_v7 = vld [vmem:[%s3619_s1 + $0x328] ss:$16 sps:$4 sm:$0xff]   ;;  %v2737_v9 = vld [vmem:[%s3619_s1 + $0x30c] ss:$16 sps:$4 sm:$0xff]  }
  0x31   : > { %1242 = vmatpush2.bf16.msra.mxu0 %v2604_v38  ;;  %v2678_v38 = vld [vmem:[%s3619_s1 + $0x28] ss:$16 sps:$4 sm:$0xff]  }
  0x32   : > { %1285 = vmatpush2.bf16.msra.mxu1 %v2605_v39  ;;  %1243 = vmatprep.subr.bf16.mxu0 %v2606_v40  ;;  %v2681_v39 = vld [vmem:[%s3619_s1 + $0x228] ss:$16 sps:$4 sm:$0xff]   ;;  %v2686_v40 = vld [vmem:[%s3619_s1 + $0xc] ss:$16 sps:$4 sm:$0xff]  }
  0x33   : > { %1286 = vmatprep.subr.bf16.mxu1 %v2608_v41  ;;  %v2689_v41 = vld [vmem:[%s3619_s1 + $0x20c] ss:$16 sps:$4 sm:$0xff]  }
  0x35   : > { %1244 = vmatpush2.bf16.msra.mxu0 %v2610_v42  ;;  %v2684_v42 = vld [vmem:[%s3619_s1 + $0x8] ss:$16 sps:$4 sm:$0xff]  }
  0x36   : > { %1287 = vmatpush2.bf16.msra.mxu1 %v2611_v43  ;;  %1245 = vmatprep.subr.bf16.mxu0 %v2612_v44  ;;  %v2687_v43 = vld [vmem:[%s3619_s1 + $0x208] ss:$16 sps:$4 sm:$0xff]   ;;  %v2692_v44 = vld [vmem:[%s3619_s1 + $0x1ec] ss:$16 sps:$4 sm:$0xff]  }
  0x37   : > { %1288 = vmatprep.subr.bf16.mxu1 %v2614_v45  ;;  %v2695_v45 = vld [vmem:[%s3619_s1 + $0x3ec] ss:$16 sps:$4 sm:$0xff]  }
  0x39   : > { %1246 = vmatpush2.bf16.msra.mxu0 %v2616_v50  ;;  %v2696_v50 = vld [vmem:[%s3619_s1 + $0x1c8] ss:$16 sps:$4 sm:$0xff]  }
  0x3a   : > { %1289 = vmatpush2.bf16.msra.mxu1 %v2617_v51  ;;  %1247 = vmatprep.subr.bf16.mxu0 %v2618_v52  ;;  %v2699_v51 = vld [vmem:[%s3619_s1 + $0x3c8] ss:$16 sps:$4 sm:$0xff]   ;;  %v2704_v52 = vld [vmem:[%s3619_s1 + $0x1ac] ss:$16 sps:$4 sm:$0xff]  }
  0x3b   : > { %1290 = vmatprep.subr.bf16.mxu1 %v2620_v55  ;;  %v2705_v55 = vld [vmem:[%s3619_s1 + $0x3a8] ss:$16 sps:$4 sm:$0xff]  }
  0x3d   : > { %1248 = vmatpush2.bf16.msra.mxu0 %v2622_v56  ;;  %v2710_v56 = vld [vmem:[%s3619_s1 + $0x18c] ss:$16 sps:$4 sm:$0xff]  }
  0x3e   : > { %1291 = vmatpush2.bf16.msra.mxu1 %v2623_v57  ;;  %1249 = vmatprep.subr.bf16.mxu0 %v2624_v58  ;;  %v2713_v57 = vld [vmem:[%s3619_s1 + $0x38c] ss:$16 sps:$4 sm:$0xff]   ;;  %v2708_v58 = vld [vmem:[%s3619_s1 + $0x188] ss:$16 sps:$4 sm:$0xff]  }
  0x3f   : > { %1292 = vmatprep.subr.bf16.mxu1 %v2626_v59  ;;  %v2711_v59 = vld [vmem:[%s3619_s1 + $0x388] ss:$16 sps:$4 sm:$0xff]  }
  0x41   : > { %1250 = vmatpush2.bf16.msra.mxu0 %v2628_v60  ;;  %v2716_v60 = vld [vmem:[%s3619_s1 + $0x16c] ss:$16 sps:$4 sm:$0xff]  }
  0x42   : > { %1293 = vmatpush2.bf16.msra.mxu1 %v2629_v61  ;;  %1251 = vmatprep.subr.bf16.mxu0 %v2630_v62  ;;  %v2719_v61 = vld [vmem:[%s3619_s1 + $0x36c] ss:$16 sps:$4 sm:$0xff]   ;;  %v2714_v62 = vld [vmem:[%s3619_s1 + $0x168] ss:$16 sps:$4 sm:$0xff]  }
  0x43   : > { %1294 = vmatprep.subr.bf16.mxu1 %v2632_v63  ;;  %v2717_v63 = vld [vmem:[%s3619_s1 + $0x368] ss:$16 sps:$4 sm:$0xff]  }
  0x45   : > { %1252 = vmatpush2.bf16.msra.mxu0 %v2634_v0  ;;  %v2722_v0 = vld [vmem:[%s3619_s1 + $0x14c] ss:$16 sps:$4 sm:$0xff]  }
  0x46   : > { %1295 = vmatpush2.bf16.msra.mxu1 %v2635_v1  ;;  %1253 = vmatprep.subr.bf16.mxu0 %v2636_v2  ;;  %v2725_v1 = vld [vmem:[%s3619_s1 + $0x34c] ss:$16 sps:$4 sm:$0xff]   ;;  %v2720_v2 = vld [vmem:[%s3619_s1 + $0x148] ss:$16 sps:$4 sm:$0xff]  }
  0x47   : > { %1296 = vmatprep.subr.bf16.mxu1 %v2638_v3  ;;  %v2723_v3 = vld [vmem:[%s3619_s1 + $0x348] ss:$16 sps:$4 sm:$0xff]  }
  0x49   : > { %1254 = vmatpush2.bf16.msra.mxu0 %v2640_v4  ;;  %v2728_v4 = vld [vmem:[%s3619_s1 + $0x12c] ss:$16 sps:$4 sm:$0xff]  }
  0x4a   : > { %1297 = vmatpush2.bf16.msra.mxu1 %v2641_v5  ;;  %1309 = vmatprep.subr.bf16.mxu0 %v2644_v10  ;;  %v2731_v5 = vld [vmem:[%s3619_s1 + $0x32c] ss:$16 sps:$4 sm:$0xff]   ;;  %v2732_v10 = vld [vmem:[%s3619_s1 + $0x108] ss:$16 sps:$4 sm:$0xff]  }
  0x4b   : > { %1352 = vmatprep.subr.bf16.mxu1 %v2647_v11  ;;  %v2735_v11 = vld [vmem:[%s3619_s1 + $0x308] ss:$16 sps:$4 sm:$0xff]  }
  0x4c   : > { %1256 = vmatmul.mubr.bf16.vlgmr.msra.gmra.mxu0 %v3153_v12 }
  0x4d   : > { %1299 = vmatmul.mubr.bf16.vlgmr.msra.gmra.mxu1 %v3155_v13  ;;  %1310 = vmatpush1.bf16.msra.mxu0 %v2642_v14  ;;  %v2740_v14 = vld [vmem:[%s3622_s4 + $0x74] ss:$8 sps:$4 sm:$0xff]  }
  0x4e   : > { %1353 = vmatpush1.bf16.msra.mxu1 %v2645_v15  ;;  %1311 = vmatprep.subr.bf16.mxu0 %v2650_v16  ;;  %v2738_v15 = vld [vmem:[%s3622_s4 + $0x70] ss:$8 sps:$4 sm:$0xff]   ;;  %v2743_v16 = vld [vmem:[%s3622_s4 + $0x64] ss:$8 sps:$4 sm:$0xff]  }
  0x4f   : > { %1354 = vmatprep.subr.bf16.mxu1 %v2653_v17  ;;  %1341 = vmatprep.mubr.bf16.mxu0 %v430_v53  ;;  %v2707_v53 = vld [vmem:[%s3619_s1 + $0x3ac] ss:$16 sps:$4 sm:$0xff]   ;;  %v2741_v17 = vld [vmem:[%s3622_s4 + $0x60] ss:$8 sps:$4 sm:$0xff]  }
  0x50   : > { %1384 = vmatprep.mubr.bf16.mxu1 %v432_v54  ;;  %v2702_v54 = vld [vmem:[%s3619_s1 + $0x1a8] ss:$16 sps:$4 sm:$0xff]  }
  0x51   : > { %1312 = vmatpush1.bf16.msra.mxu0 %v2648_v18  ;;  %v2746_v18 = vld [vmem:[%s3622_s4 + $0x54] ss:$8 sps:$4 sm:$0xff]  }
  0x52   : > { %1355 = vmatpush1.bf16.msra.mxu1 %v2651_v19  ;;  %1313 = vmatprep.subr.bf16.mxu0 %v2656_v20  ;;  %v2744_v19 = vld [vmem:[%s3622_s4 + $0x50] ss:$8 sps:$4 sm:$0xff]   ;;  %v2752_v20 = vld [vmem:[%s3622_s4 + $0x34] ss:$8 sps:$4 sm:$0xff]  }
  0x53   : > { %1356 = vmatprep.subr.bf16.mxu1 %v2659_v21  ;;  %v2750_v21 = vld [vmem:[%s3622_s4 + $0x30] ss:$8 sps:$4 sm:$0xff]  }
  0x55   : > { %1314 = vmatpush1.bf16.msra.mxu0 %v2654_v22  ;;  %v2755_v22 = vld [vmem:[%s3622_s4 + $0x24] ss:$8 sps:$4 sm:$0xff]  }
  0x56   : > { %1357 = vmatpush1.bf16.msra.mxu1 %v2657_v23  ;;  %1315 = vmatprep.subr.bf16.mxu0 %v2662_v24  ;;  %v2788_v23 = vld [vmem:[%s3622_s4 + $0x174] ss:$8 sps:$4 sm:$0xff]   ;;  %v2753_v24 = vld [vmem:[%s3622_s4 + $0x20] ss:$8 sps:$4 sm:$0xff]  }
  0x57   : > { %1358 = vmatprep.subr.bf16.mxu1 %v2665_v25  ;;  %v2786_v25 = vld [vmem:[%s3622_s4 + $0x170] ss:$8 sps:$4 sm:$0xff]  }
  0x59   : > { %1316 = vmatpush1.bf16.msra.mxu0 %v2660_v26  ;;  %v2758_v26 = vld [vmem:[%s3622_s4 + $0x14] ss:$8 sps:$4 sm:$0xff]  }
  0x5a   : > { %1359 = vmatpush1.bf16.msra.mxu1 %v2663_v27  ;;  %1317 = vmatprep.subr.bf16.mxu0 %v2668_v28  ;;  %v2791_v27 = vld [vmem:[%s3622_s4 + $0x164] ss:$8 sps:$4 sm:$0xff]   ;;  %v2789_v28 = vld [vmem:[%s3622_s4 + $0x160] ss:$8 sps:$4 sm:$0xff]  }
  0x5b   : > { %1360 = vmatprep.subr.bf16.mxu1 %v2671_v29  ;;  %v2794_v29 = vld [vmem:[%s3622_s4 + $0x154] ss:$8 sps:$4 sm:$0xff]  }
  0x5d   : > { %1318 = vmatpush1.bf16.msra.mxu0 %v2666_v30  ;;  %v2756_v30 = vld [vmem:[%s3622_s4 + $0x10] ss:$8 sps:$4 sm:$0xff]  }
  0x5e   : > { %1361 = vmatpush1.bf16.msra.mxu1 %v2669_v31  ;;  %1319 = vmatprep.subr.bf16.mxu0 %v2674_v32  ;;  %v2761_v31 = vld [vmem:[%s3622_s4 + $0x4] ss:$8 sps:$4 sm:$0xff]   ;;  %v2792_v32 = vld [vmem:[%s3622_s4 + $0x150] ss:$8 sps:$4 sm:$0xff]  }
  0x5f   : > { %1362 = vmatprep.subr.bf16.mxu1 %v2677_v33  ;;  %v2797_v33 = vld [vmem:[%s3622_s4 + $0x144] ss:$8 sps:$4 sm:$0xff]  }
  0x61   : > { %1320 = vmatpush1.bf16.msra.mxu0 %v2672_v34  ;;  %v2759_v34 = vld [vmem:[%s3622_s4] ss:$8 sps:$4 sm:$0xff]  }
  0x62   : > { %1363 = vmatpush1.bf16.msra.mxu1 %v2675_v35  ;;  %1321 = vmatprep.subr.bf16.mxu0 %v2680_v36  ;;  %v2764_v35 = vld [vmem:[%s3622_s4 + $0xf4] ss:$8 sps:$4 sm:$0xff]   ;;  %v2795_v36 = vld [vmem:[%s3622_s4 + $0x140] ss:$8 sps:$4 sm:$0xff]  }
  0x63   : > { %1364 = vmatprep.subr.bf16.mxu1 %v2683_v37  ;;  %v2800_v37 = vld [vmem:[%s3622_s4 + $0x134] ss:$8 sps:$4 sm:$0xff]  }
  0x65   : > { %1322 = vmatpush1.bf16.msra.mxu0 %v2678_v38  ;;  %v2762_v38 = vld [vmem:[%s3622_s4 + $0xf0] ss:$8 sps:$4 sm:$0xff]  }
  0x66   : > { %1365 = vmatpush1.bf16.msra.mxu1 %v2681_v39  ;;  %1323 = vmatprep.subr.bf16.mxu0 %v2686_v40  ;;  %v2767_v39 = vld [vmem:[%s3622_s4 + $0xe4] ss:$8 sps:$4 sm:$0xff]   ;;  %v2798_v40 = vld [vmem:[%s3622_s4 + $0x130] ss:$8 sps:$4 sm:$0xff]  }
  0x67   : > { %1366 = vmatprep.subr.bf16.mxu1 %v2689_v41  ;;  %v2803_v41 = vld [vmem:[%s3622_s4 + $0x124] ss:$8 sps:$4 sm:$0xff]  }
  0x69   : > { %1324 = vmatpush1.bf16.msra.mxu0 %v2684_v42  ;;  %v2765_v42 = vld [vmem:[%s3622_s4 + $0xe0] ss:$8 sps:$4 sm:$0xff]  }
  0x6a   : > { %1367 = vmatpush1.bf16.msra.mxu1 %v2687_v43  ;;  %1325 = vmatprep.subr.bf16.mxu0 %v2692_v44  ;;  %v2770_v43 = vld [vmem:[%s3622_s4 + $0xd4] ss:$8 sps:$4 sm:$0xff]   ;;  %v2801_v44 = vld [vmem:[%s3622_s4 + $0x120] ss:$8 sps:$4 sm:$0xff]  }
  0x6b   : > { %1368 = vmatprep.subr.bf16.mxu1 %v2695_v45  ;;  %v2806_v45 = vld [vmem:[%s3622_s4 + $0x114] ss:$8 sps:$4 sm:$0xff]  }
  0x6d   : > { %1326 = vmatpush2.bf16.msra.mxu0 %v2690_v46  ;;  %v2768_v46 = vld [vmem:[%s3622_s4 + $0xd0] ss:$8 sps:$4 sm:$0xff]  }
  0x6e   : > { %1369 = vmatpush2.bf16.msra.mxu1 %v2693_v47  ;;  %1327 = vmatprep.subr.bf16.mxu0 %v2698_v48  ;;  %v2773_v47 = vld [vmem:[%s3622_s4 + $0xc4] ss:$8 sps:$4 sm:$0xff]   ;;  %v2804_v48 = vld [vmem:[%s3622_s4 + $0x110] ss:$8 sps:$4 sm:$0xff]  }
  0x6f   : > { %1370 = vmatprep.subr.bf16.mxu1 %v2701_v49  ;;  %v2809_v49 = vld [vmem:[%s3622_s4 + $0x104] ss:$8 sps:$4 sm:$0xff]  }
  0x71   : > { %1328 = vmatpush2.bf16.msra.mxu0 %v2696_v50  ;;  %v2771_v50 = vld [vmem:[%s3622_s4 + $0xc0] ss:$8 sps:$4 sm:$0xff]  }
  0x72   : > { %1371 = vmatpush2.bf16.msra.mxu1 %v2699_v51  ;;  %1329 = vmatprep.subr.bf16.mxu0 %v2704_v52  ;;  %v2776_v51 = vld [vmem:[%s3622_s4 + $0xb4] ss:$8 sps:$4 sm:$0xff]   ;;  %v2807_v52 = vld [vmem:[%s3622_s4 + $0x100] ss:$8 sps:$4 sm:$0xff]  }
  0x73   : > { %1372 = vmatprep.subr.bf16.mxu1 %v2707_v53  ;;  %v2812_v53 = vld [vmem:[%s3622_s4 + $0x1f4] ss:$8 sps:$4 sm:$0xff]  }
  0x75   : > { %1330 = vmatpush2.bf16.msra.mxu0 %v2702_v54  ;;  %v2774_v54 = vld [vmem:[%s3622_s4 + $0xb0] ss:$8 sps:$4 sm:$0xff]  }
  0x76   : > { %1373 = vmatpush2.bf16.msra.mxu1 %v2705_v55  ;;  %1331 = vmatprep.subr.bf16.mxu0 %v2710_v56  ;;  %v2779_v55 = vld [vmem:[%s3622_s4 + $0xa4] ss:$8 sps:$4 sm:$0xff]   ;;  %v2810_v56 = vld [vmem:[%s3622_s4 + $0x1f0] ss:$8 sps:$4 sm:$0xff]  }
  0x77   : > { %1374 = vmatprep.subr.bf16.mxu1 %v2713_v57  ;;  %v2815_v57 = vld [vmem:[%s3622_s4 + $0x1e4] ss:$8 sps:$4 sm:$0xff]  }
  0x79   : > { %1332 = vmatpush2.bf16.msra.mxu0 %v2708_v58  ;;  %v2777_v58 = vld [vmem:[%s3622_s4 + $0xa0] ss:$8 sps:$4 sm:$0xff]  }
  0x7a   : > { %1375 = vmatpush2.bf16.msra.mxu1 %v2711_v59  ;;  %1333 = vmatprep.subr.bf16.mxu0 %v2716_v60  ;;  %v2782_v59 = vld [vmem:[%s3622_s4 + $0x94] ss:$8 sps:$4 sm:$0xff]   ;;  %v2813_v60 = vld [vmem:[%s3622_s4 + $0x1e0] ss:$8 sps:$4 sm:$0xff]  }
  0x7b   : > { %1376 = vmatprep.subr.bf16.mxu1 %v2719_v61  ;;  %v2818_v61 = vld [vmem:[%s3622_s4 + $0x1d4] ss:$8 sps:$4 sm:$0xff]  }
  0x7d   : > { %1334 = vmatpush2.bf16.msra.mxu0 %v2714_v62  ;;  %v2780_v62 = vld [vmem:[%s3622_s4 + $0x90] ss:$8 sps:$4 sm:$0xff]  }
  0x7e   : > { %1377 = vmatpush2.bf16.msra.mxu1 %v2717_v63  ;;  %1335 = vmatprep.subr.bf16.mxu0 %v2722_v0  ;;  %v2785_v63 = vld [vmem:[%s3622_s4 + $0x84] ss:$8 sps:$4 sm:$0xff]   ;;  %v2816_v0 = vld [vmem:[%s3622_s4 + $0x1d0] ss:$8 sps:$4 sm:$0xff]  }
  0x7f   : > { %1378 = vmatprep.subr.bf16.mxu1 %v2725_v1  ;;  %v2821_v1 = vld [vmem:[%s3622_s4 + $0x1c4] ss:$8 sps:$4 sm:$0xff]  }
  0x81   : > { %1336 = vmatpush2.bf16.msra.mxu0 %v2720_v2  ;;  %v2783_v2 = vld [vmem:[%s3622_s4 + $0x80] ss:$8 sps:$4 sm:$0xff]  }
  0x82   : > { %1379 = vmatpush2.bf16.msra.mxu1 %v2723_v3  ;;  %1337 = vmatprep.subr.bf16.mxu0 %v2728_v4  ;;  %v2819_v3 = vld [vmem:[%s3622_s4 + $0x1c0] ss:$8 sps:$4 sm:$0xff]   ;;  %v2824_v4 = vld [vmem:[%s3622_s4 + $0x1b4] ss:$8 sps:$4 sm:$0xff]  }
  0x83   : > { %1380 = vmatprep.subr.bf16.mxu1 %v2731_v5  ;;  %v2822_v5 = vld [vmem:[%s3622_s4 + $0x1b0] ss:$8 sps:$4 sm:$0xff]  }
  0x85   : > { %1338 = vmatpush2.bf16.msra.mxu0 %v2726_v6  ;;  %v2827_v6 = vld [vmem:[%s3622_s4 + $0x1a4] ss:$8 sps:$4 sm:$0xff]  }
  0x86   : > { %1381 = vmatpush2.bf16.msra.mxu1 %v2729_v7  ;;  %1339 = vmatprep.subr.bf16.mxu0 %v2734_v8  ;;  %v2825_v7 = vld [vmem:[%s3622_s4 + $0x1a0] ss:$8 sps:$4 sm:$0xff]   ;;  %v2830_v8 = vld [vmem:[%s3622_s4 + $0x194] ss:$8 sps:$4 sm:$0xff]  }
  0x87   : > { %1382 = vmatprep.subr.bf16.mxu1 %v2737_v9  ;;  %v2828_v9 = vld [vmem:[%s3622_s4 + $0x190] ss:$8 sps:$4 sm:$0xff]  }
  0x89   : > { %1340 = vmatpush2.bf16.msra.mxu0 %v2732_v10  ;;  %v2831_v10 = vld [vmem:[%s3622_s4 + $0x180] ss:$8 sps:$4 sm:$0xff]  }
  0x8a   : > { %1383 = vmatpush2.bf16.msra.mxu1 %v2735_v11  ;;  %1841 = vmatprep.subr.bf16.mxu0 %v2740_v14  ;;  %v2833_v11 = vld [vmem:[%s3622_s4 + $0x184] ss:$8 sps:$4 sm:$0xff]   ;;  %v563_v14 = vlaneseq }
  0x8b   : > { %1884 = vmatprep.subr.bf16.mxu1 %v2788_v23 }
  0x8c   : > { %1342 = vmatmul.mubr.bf16.vlgmr.msra.gmra.mxu0 %v3153_v12  ;;  %v2749_v12 = vld [vmem:[%s3622_s4 + $0x44] ss:$8 sps:$4 sm:$0xff]  }
  0x8d   : > { %1385 = vmatmul.mubr.bf16.vlgmr.msra.gmra.mxu1 %v3155_v13  ;;  %1842 = vmatpush1.bf16.msra.mxu0 %v2738_v15  ;;  %v2747_v13 = vld [vmem:[%s3622_s4 + $0x40] ss:$8 sps:$4 sm:$0xff]   ;;  %v3540_v15 = vshrl.u32 %v563_v14, 7 }
  0x8e   : > { %1843 = vmatprep.subr.bf16.mxu0 %v2743_v16  ;;  %1885 = vmatpush1.bf16.msra.mxu1 %v2786_v25  ;;  %v1403_v25 = vld [vmem:[%s3621_s3] sm:$0xf] }
  0x8f   : > { %1886 = vmatprep.subr.bf16.mxu1 %v2791_v27  ;;  %v3543_v16 = vsub.s32 0, %v3540_v15 }
  0x91   : > { %1844 = vmatpush1.bf16.msra.mxu0 %v2741_v17  ;;  %v3546_v17 = vsub.s32 1, %v3540_v15 }
  0x92   : > { %1845 = vmatprep.subr.bf16.mxu0 %v2746_v18  ;;  %1887 = vmatpush1.bf16.msra.mxu1 %v2789_v28  ;;  %v561_v18 = vld [vmem:[%s3620_s2] sm:$0xf] }
  0x93   : > { %1888 = vmatprep.subr.bf16.mxu1 %v2794_v29 }
  0x95   : > { %1846 = vmatpush1.bf16.msra.mxu0 %v2744_v19  ;;  %v566_v19 = vrot.slane %v561_v18, %v3543_v16 }
  0x96   : > { %1847 = vmatprep.subr.bf16.mxu0 %v2749_v12  ;;  %1889 = vmatpush1.bf16.msra.mxu1 %v2792_v32  ;;  %v570_v12 = vrot.slane %v561_v18, %v3546_v17 }
  0x97   : > { %1890 = vmatprep.subr.bf16.mxu1 %v2797_v33  ;;  %v1408_v33 = vrot.slane %v1403_v25, %v3543_v16 }
  0x99   : > { %1848 = vmatpush1.bf16.msra.mxu0 %v2747_v13 }
  0x9a   : > { %1849 = vmatprep.subr.bf16.mxu0 %v2752_v20  ;;  %1891 = vmatpush1.bf16.msra.mxu1 %v2795_v36 }
  0x9b   : > { %1892 = vmatprep.subr.bf16.mxu1 %v2800_v37 }
  0x9d   : > { %1850 = vmatpush1.bf16.msra.mxu0 %v2750_v21 }
  0x9e   : > { %1851 = vmatprep.subr.bf16.mxu0 %v2755_v22  ;;  %1893 = vmatpush1.bf16.msra.mxu1 %v2798_v40 }
  0x9f   : > { %1894 = vmatprep.subr.bf16.mxu1 %v2803_v41 }
  0xa1   : > { %1852 = vmatpush1.bf16.msra.mxu0 %v2753_v24 }
  0xa2   : > { %1853 = vmatprep.subr.bf16.mxu0 %v2758_v26  ;;  %1895 = vmatpush1.bf16.msra.mxu1 %v2801_v44 }
  0xa3   : > { %1896 = vmatprep.subr.bf16.mxu1 %v2806_v45 }
  0xa5   : > { %1854 = vmatpush1.bf16.msra.mxu0 %v2756_v30  ;;  %v1412_v30 = vrot.slane %v1403_v25, %v3546_v17 }
  0xa6   : > { %1855 = vmatprep.subr.bf16.mxu0 %v2761_v31  ;;  %1897 = vmatpush1.bf16.msra.mxu1 %v2804_v48  ;;  %v573_v48 = vsub.s32 2, %v3540_v15 }
  0xa7   : > { %1898 = vmatprep.subr.bf16.mxu1 %v2809_v49  ;;  %v577_v49 = vsub.s32 3, %v3540_v15 }
  0xa9   : > { %1856 = vmatpush1.bf16.msra.mxu0 %v2759_v34 }
  0xaa   : > { %1857 = vmatprep.subr.bf16.mxu0 %v2764_v35  ;;  %1899 = vmatpush1.bf16.msra.mxu1 %v2807_v52 }
  0xab   : > { %1900 = vmatprep.subr.bf16.mxu1 %v2812_v53 }
  0xad   : > { %1858 = vmatpush2.bf16.msra.mxu0 %v2762_v38 }
  0xae   : > { %1859 = vmatprep.subr.bf16.mxu0 %v2767_v39  ;;  %1901 = vmatpush2.bf16.msra.mxu1 %v2810_v56 }
  0xaf   : > { %1902 = vmatprep.subr.bf16.mxu1 %v2815_v57 }
  0xb1   : > { %1860 = vmatpush2.bf16.msra.mxu0 %v2765_v42 }
  0xb2   : > { %1861 = vmatprep.subr.bf16.mxu0 %v2770_v43  ;;  %1903 = vmatpush2.bf16.msra.mxu1 %v2813_v60 }
  0xb3   : > { %1904 = vmatprep.subr.bf16.mxu1 %v2818_v61  ;;  %v1420_v61 = vrot.slane %v1403_v25, %v577_v49 }
  0xb5   : > { %1862 = vmatpush2.bf16.msra.mxu0 %v2768_v46 }
  0xb6   : > { %1863 = vmatprep.subr.bf16.mxu0 %v2773_v47  ;;  %1905 = vmatpush2.bf16.msra.mxu1 %v2816_v0  ;;  %v1416_v0 = vrot.slane %v1403_v25, %v573_v48 }
  0xb7   : > { %1906 = vmatprep.subr.bf16.mxu1 %v2821_v1 }
  0xb9   : > { %1864 = vmatpush2.bf16.msra.mxu0 %v2771_v50  ;;  %v574_v50 = vrot.slane %v561_v18, %v573_v48 }
  0xba   : > { %1865 = vmatprep.subr.bf16.mxu0 %v2776_v51  ;;  %1907 = vmatpush2.bf16.msra.mxu1 %v2819_v3  ;;  %v578_v51 = vrot.slane %v561_v18, %v577_v49 }
  0xbb   : > { %1908 = vmatprep.subr.bf16.mxu1 %v2824_v4 }
  0xbd   : > { %1866 = vmatpush2.bf16.msra.mxu0 %v2774_v54 }
  0xbe   : > { %1867 = vmatprep.subr.bf16.mxu0 %v2779_v55  ;;  %1909 = vmatpush2.bf16.msra.mxu1 %v2822_v5 }
  0xbf   : > { %1910 = vmatprep.subr.bf16.mxu1 %v2827_v6 }
  0xc1   : > { %1868 = vmatpush2.bf16.msra.mxu0 %v2777_v58 }
  0xc2   : > { %1869 = vmatprep.subr.bf16.mxu0 %v2782_v59  ;;  %1911 = vmatpush2.bf16.msra.mxu1 %v2825_v7 }
  0xc3   : > { %1912 = vmatprep.subr.bf16.mxu1 %v2830_v8 }
  0xc5   : > { %1870 = vmatpush2.bf16.msra.mxu0 %v2780_v62 }
  0xc6   : > { %1871 = vmatprep.subr.bf16.mxu0 %v2785_v63  ;;  %1913 = vmatpush2.bf16.msra.mxu1 %v2828_v9 }
  0xc7   : > { %1914 = vmatprep.subr.bf16.mxu1 %v2833_v11 }
  0xc9   : > { %1872 = vmatpush2.bf16.msra.mxu0 %v2783_v2 }
  0xca   : > { %1915 = vmatpush2.bf16.msra.mxu1 %v2831_v10 }
 0x10c   : > { %v1257_v13 = vpop.f32.mrf.mxu0 }
 0x10d   : > { %v1300_v20 = vpop.f32.mrf.mxu1  ;;  %v1258_v23 = vadd.f32 %v1257_v13, %v566_v19 }
 0x10e   : > { %v1259_v21 = vpop.f32.mrf.mxu0 }
 0x10f   : > { %v1302_v22 = vpop.f32.mrf.mxu1  ;;  %v1260_v24 = vadd.f32 %v1259_v21, %v570_v12  ;;  %v1301_v32 = vadd.f32 %v1300_v20, %v1258_v23  ;;  %v1509_v21 = vld [vmem:[%s3623_s5] sm:$0x3] }
 0x110   : > { %v1261_v26 = vpop.f32.mrf.mxu0  ;;  %v1514_v23 = vrot.slane %v1509_v21, %v3543_v16 }
 0x111   : > { %v1262_v27 = vadd.f32 %v1261_v26, %v566_v19  ;;  %v1304_v28 = vpop.f32.mrf.mxu1  ;;  %v1303_v29 = vadd.f32 %v1302_v22, %v1260_v24  ;;  %v1425_v40 = vmul.f32 %v1408_v33, %v1301_v32  ;;  %vm1395_vm2 = vcmp.ge.f32.partialorder %v1301_v32, 0.0 }
 0x112   : > { %v1263_v31 = vpop.f32.mrf.mxu0  ;;  %v1518_v24 = vrot.slane %v1509_v21, %v3546_v17 }
 0x113   : > { %v1305_v34 = vadd.f32 %v1304_v28, %v1262_v27  ;;  %v1264_v35 = vadd.f32 %v1263_v31, %v570_v12  ;;  %v1306_v37 = vpop.f32.mrf.mxu1  ;;  %v1426_v38 = vmul.f32 %v1412_v30, %v1303_v29  ;;  %vm1396_vm1 = vcmp.ge.f32.partialorder %v1303_v29, 0.0  ;;  %v1931_v27 = vld [vmem:[%s3624_s6] sm:$0x3] }
 0x114   : > { %v1433_v45 = vsel %vm1395_vm2, %v1301_v32, %v1425_v40 }
 0x115   : > { %v1429_v36 = vmul.f32 %v1408_v33, %v1305_v34  ;;  %vm1399_vm0 = vcmp.ge.f32.partialorder %v1305_v34, 0.0  ;;  %v1307_v39 = vadd.f32 %v1306_v37, %v1264_v35  ;;  %v1434_v43 = vsel %vm1396_vm1, %v1303_v29, %v1426_v38 }
 0x116   : > { %v1936_v35 = vrot.slane %v1931_v27, %v3543_v16 }
 0x117   : > { %vm1400_vm3 = vcmp.ge.f32.partialorder %v1307_v39, 0.0  ;;  %v1430_v41 = vmul.f32 %v1412_v30, %v1307_v39  ;;  %v1437_v42 = vsel %vm1399_vm0, %v1305_v34, %v1429_v36  ;;  %v1940_v30 = vrot.slane %v1931_v27, %v3546_v17 }
 0x118   : > { %v1441_v47 = vpack.c.bf16 %v1437_v42, %v1433_v45 }
 0x119   : > { %v1438_v44 = vsel %vm1400_vm3, %v1307_v39, %v1430_v41 }
 0x11a   : > { %v1442_v46 = vpack.c.bf16 %v1438_v44, %v1434_v43 }
 0x11c   : > { %1873 = vmatprep.mubr.bf16.mxu0 %v1442_v46 }
 0x11d   : > { %1874 = vmatmul.mubr.bf16.vlgmr.msra.gmra.mxu0 %v1441_v47 }
 0x14c   : > { %v1343_v52 = vpop.f32.mrf.mxu0 }
 0x14d   : > { %v1386_v53 = vpop.f32.mrf.mxu1  ;;  %v1344_v56 = vadd.f32 %v1343_v52, %v574_v50  ;;  %v2834_v52 = vld [vmem:[%s3625_s7] sm:$0xff]  }
 0x14e   : > { %v1345_v54 = vpop.f32.mrf.mxu0 }
 0x14f   : > { %v1388_v55 = vpop.f32.mrf.mxu1  ;;  %v1346_v57 = vadd.f32 %v1345_v54, %v578_v51  ;;  %v1387_v1 = vadd.f32 %v1386_v53, %v1344_v56 }
 0x150   : > { %v1347_v58 = vpop.f32.mrf.mxu0 }
 0x151   : > { %v1348_v59 = vadd.f32 %v1347_v58, %v574_v50  ;;  %v1390_v60 = vpop.f32.mrf.mxu1  ;;  %v1389_v62 = vadd.f32 %v1388_v55, %v1346_v57  ;;  %v1427_v8 = vmul.f32 %v1416_v0, %v1387_v1  ;;  %vm1397_vm6 = vcmp.ge.f32.partialorder %v1387_v1, 0.0 }
 0x152   : > { %v1349_v63 = vpop.f32.mrf.mxu0  ;;  %v2860_v55 = vmov 0.0  }
 0x153   : > { %v1391_v2 = vadd.f32 %v1390_v60, %v1348_v59  ;;  %v1350_v3 = vadd.f32 %v1349_v63, %v578_v51  ;;  %v1392_v5 = vpop.f32.mrf.mxu1  ;;  %v1428_v6 = vmul.f32 %v1420_v61, %v1389_v62  ;;  %vm1398_vm5 = vcmp.ge.f32.partialorder %v1389_v62, 0.0  ;;  %2492 = vmatprep.subr.bf16.mxu0 %v2860_v55  ;;  %2498 = vmatprep.subr.bf16.mxu1 %v2860_v55  ;;  %v2835_v60 = vld [vmem:[%s3628_s10 + $0x38] sm:$0xff]   ;;  %v2836_v63 = vld [vmem:[%s3628_s10 + $0x30] sm:$0xff]  }
 0x154   : > { %v1435_v19 = vsel %vm1397_vm6, %v1387_v1, %v1427_v8  ;;  %2493 = vmatpush3.bf16.msra.mxu0 %v2834_v52  ;;  %2494 = vmatprep.mubr.msk.bf16.mxu0 %vm2862_vm12, %v2860_v55 }
 0x155   : > { %v1431_v4 = vmul.f32 %v1416_v0, %v1391_v2  ;;  %vm1401_vm4 = vcmp.ge.f32.partialorder %v1391_v2, 0.0  ;;  %v1393_v7 = vadd.f32 %v1392_v5, %v1350_v3  ;;  %v1436_v11 = vsel %vm1398_vm5, %v1389_v62, %v1428_v6  ;;  %v2837_v3 = vld [vmem:[%s3628_s10 + $0x28] sm:$0xff]   ;;  %v2839_v5 = vld [vmem:[%s3628_s10 + $0x18] sm:$0xff]  }
 0x157   : > { %vm1402_vm7 = vcmp.ge.f32.partialorder %v1393_v7, 0.0  ;;  %v1432_v9 = vmul.f32 %v1420_v61, %v1393_v7  ;;  %v1439_v10 = vsel %vm1401_vm4, %v1391_v2, %v1431_v4  ;;  %v2838_v4 = vld [vmem:[%s3628_s10 + $0x20] sm:$0xff]  }
 0x158   : > { %v1443_v13 = vpack.c.bf16 %v1439_v10, %v1435_v19  ;;  %v2841_v19 = vld [vmem:[%s3628_s10 + $0x8] sm:$0xff]  }
 0x159   : > { %v1440_v18 = vsel %vm1402_vm7, %v1393_v7, %v1432_v9 }
 0x15a   : > { %v1444_v12 = vpack.c.bf16 %v1440_v18, %v1436_v11  ;;  %v2840_v18 = vld [vmem:[%s3628_s10 + $0x10] sm:$0xff]  }
 0x15c   : > { %1916 = vmatprep.mubr.bf16.mxu1 %v1444_v12  ;;  %v2842_v12 = vld [vmem:[%s3628_s10] sm:$0xff]  }
 0x15d   : > { %1917 = vmatmul.mubr.bf16.vlgmr.msra.gmra.mxu1 %v1443_v13  ;;  %v2462_v13 = vld [vmem:[%s3626_s8] ss:$0 sm:$0xff] }
 0x15e   : > { %2514 = vmatprep.mubr.msk.bf16.mxu1 %vm2862_vm12, %v2860_v55  ;;  %2499 = vmatpush3.bf16.msra.mxu1 %v2835_v60 }
 0x15f   : > { %2500 = vmatprep.subr.bf16.mxu1 %v2860_v55 }
 0x162   : > { %2501 = vmatpush3.bf16.msra.mxu1 %v2836_v63 }
 0x163   : > { %2502 = vmatprep.subr.bf16.mxu1 %v2860_v55 }
 0x166   : > { %2503 = vmatpush3.bf16.msra.mxu1 %v2837_v3 }
 0x167   : > { %2504 = vmatprep.subr.bf16.mxu1 %v2860_v55 }
 0x16a   : > { %2505 = vmatpush3.bf16.msra.mxu1 %v2838_v4 }
 0x16b   : > { %2506 = vmatprep.subr.bf16.mxu1 %v2860_v55 }
 0x16e   : > { %2507 = vmatpush3.bf16.msra.mxu1 %v2839_v5 }
 0x16f   : > { %2508 = vmatprep.subr.bf16.mxu1 %v2860_v55 }
 0x172   : > { %2509 = vmatpush3.bf16.msra.mxu1 %v2840_v18 }
 0x173   : > { %2510 = vmatprep.subr.bf16.mxu1 %v2860_v55 }
 0x176   : > { %2511 = vmatpush3.bf16.msra.mxu1 %v2841_v19 }
 0x177   : > { %2512 = vmatprep.subr.bf16.mxu1 %v2860_v55 }
 0x17a   : > { %2513 = vmatpush3.bf16.msra.mxu1 %v2842_v12 }
 0x1dd   : > { %v1875_v20 = vpop.f32.mrf.mxu0 }
 0x1de   : > { %v1876_v28 = vadd.f32 %v1875_v20, %v1514_v23 }
 0x1df   : > { %v1877_v22 = vpop.f32.mrf.mxu0 }
 0x1e0   : > { %v1878_v29 = vadd.f32 %v1877_v22, %v1518_v24  ;;  %v2465_v22 = vld [vmem:[%s3627_s9] ss:$0 sm:$0xff] }
 0x1e1   : > { %v1879_v25 = vpop.f32.mrf.mxu0 }
 0x1e2   : > { %v1880_v33 = vadd.f32 %v1879_v25, %v1514_v23 }
 0x1e3   : > { %v1881_v31 = vpop.f32.mrf.mxu0 }
 0x1e4   : > { %v1882_v38 = vadd.f32 %v1881_v31, %v1518_v24 }
 0x21d   : > { %v1918_v26 = vpop.f32.mrf.mxu1 }
 0x21e   : > { %v1919_v34 = vadd.f32 %v1918_v26, %v1876_v28 }
 0x21f   : > { %v1920_v32 = vpop.f32.mrf.mxu1 }
 0x220   : > { %v1921_v36 = vadd.f32 %v1920_v32, %v1878_v29  ;;  %v1943_v42 = vmul.f32 %v1936_v35, %v1919_v34  ;;  %vm1927_vm9 = vcmp.ge.f32.partialorder %v1919_v34, 0.0  ;;  %v2466_v32 = vld [vmem:[%s3629_s11] ss:$0 sm:$0xff] }
 0x221   : > { %v1922_v37 = vpop.f32.mrf.mxu1 }
 0x222   : > { %v1944_v39 = vmul.f32 %v1940_v30, %v1921_v36  ;;  %v1923_v40 = vadd.f32 %v1922_v37, %v1880_v33  ;;  %vm1928_vm8 = vcmp.ge.f32.partialorder %v1921_v36, 0.0  ;;  %v1947_v46 = vsel %vm1927_vm9, %v1919_v34, %v1943_v42 }
 0x223   : > { %v1924_v41 = vpop.f32.mrf.mxu1 }
 0x224   : > { %v1945_v43 = vmul.f32 %v1936_v35, %v1923_v40  ;;  %v1925_v44 = vadd.f32 %v1924_v41, %v1882_v38  ;;  %vm1929_vm10 = vcmp.ge.f32.partialorder %v1923_v40, 0.0  ;;  %v1948_v45 = vsel %vm1928_vm8, %v1921_v36, %v1944_v39 }
 0x225   : > { %v1951_v49 = vmax.f32 %v1947_v46, %v1948_v45  ;;  %v2192_v46 = vstv %s2477_s19 }
 0x226   : > { %vm1930_vm11 = vcmp.ge.f32.partialorder %v1925_v44, 0.0  ;;  %v1946_v17 = vmul.f32 %v1940_v30, %v1925_v44  ;;  %v1949_v47 = vsel %vm1929_vm10, %v1923_v40, %v1945_v43 }
 0x228   : > { %v1950_v48 = vsel %vm1930_vm11, %v1925_v44, %v1946_v17 }
 0x229   : > { %v1952_v16 = vmax.f32 %v1949_v47, %v1950_v48  ;;  %v2187_v47 = vand.u32 127, %v563_v14  ;;  %v2193_v48 = vadd.s32 %v2192_v46, %v3540_v15 }
 0x22b   : > { %v2531_v50 = vpack.i.bf16 %v1952_v16, %v1951_v49  ;;  %vm2195_vm0 = vcmp.eq.s32.totalorder %v2187_v47, 0  ;;  %vm2196_vm1 = vcmp.lt.s32.totalorder %v2193_v48, 32 }
 0x22c   : > { %vm2198_vm2 = vmand %vm2195_vm0, %vm2196_vm1 }
 0x22d   : > { %2532 = vrot.lane.b32.xlu0 %v2531_v50, %s2859_s28 }
 0x29f   : > { %v2533_v51 = vpop.permute.xlu0 %2532 }
 0x2a0   : > { %v2535_v53 = vunpack.i.h.bf16 %v2533_v51  ;;  %v2534_v54 = vunpack.i.l.bf16 %v2533_v51 }
 0x2a2   : > { %v1962_v56 = vmax.f32 %v1952_v16, %v2535_v53  ;;  %v1961_v57 = vmax.f32 %v1951_v49, %v2534_v54  ;;  %v2190_v49 = vadd.s32 8, %v3540_v15 }
 0x2a4   : > { %v2536_v58 = vpack.i.bf16 %v1962_v56, %v1961_v57  ;;  %v2194_v16 = vadd.s32 %v2192_v46, %v2190_v49 }
 0x2a6   : > { %2537 = vrot.lane.b32.xlu0 %v2536_v58, %s2861_s13  ;;  %vm2197_vm3 = vcmp.lt.s32.totalorder %v2194_v16, 32 }
 0x2a7   : > { %vm2199_vm4 = vmand %vm2195_vm0, %vm2197_vm3 }
 0x318   : > { %v2538_v59 = vpop.permute.xlu0 %2537 }
 0x319   : > { %v2540_v61 = vunpack.i.h.bf16 %v2538_v59  ;;  %v2539_v62 = vunpack.i.l.bf16 %v2538_v59 }
 0x31b   : > { %v1972_v0 = vmax.f32 %v1962_v56, %v2540_v61  ;;  %v1971_v1 = vmax.f32 %v1961_v57, %v2539_v62 }
 0x31d   : > { %v2541_v2 = vpack.i.bf16 %v1972_v0, %v1971_v1 }
 0x31f   : > { %2542 = vrot.lane.b32.xlu1 %v2541_v2, %s2863_s24 }
 0x391   : > { %v2543_v6 = vpop.permute.xlu1 %2542 }
 0x392   : > { %v2545_v7 = vunpack.i.h.bf16 %v2543_v6  ;;  %v2544_v8 = vunpack.i.l.bf16 %v2543_v6 }
 0x394   : > { %v1982_v9 = vmax.f32 %v1972_v0, %v2545_v7  ;;  %v1981_v10 = vmax.f32 %v1971_v1, %v2544_v8 }
 0x396   : > { %v1983_v11 = vpack.c.bf16 %v1982_v9, %v1981_v10 }
 0x398   : > { %2495 = vmatmul.mubr.msk.bf16.vlgmr.msra.gmra.mxu0 %vm1999_vm13, %v1983_v11 }
 0x458   : > { %v2037_v20 = vpop.f32.mrf.mxu0 }
 0x459   : > { %v2038_v21 = vadd.f32 %v2462_v13, %v2037_v20 }
 0x45a   : > { %v2496_v23 = vpop.f32.mrf.mxu0 }
 0x45b   : > { %v2053_v25 = vmul.f32 %v2465_v22, %v2038_v21  ;;  %vm2044_vm14 = vcmp.ge.f32.partialorder %v2038_v21, 0.0 }
 0x45c   : > { %v2040_v24 = vpop.f32.mrf.mxu0 }
 0x45d   : > { %v2041_v26 = vadd.f32 %v2462_v13, %v2040_v24  ;;  %v2055_v29 = vsel %vm2044_vm14, %v2038_v21, %v2053_v25 }
 0x45e   : > { %v2497_v27 = vpop.f32.mrf.mxu0 }
 0x45f   : > { %vm2045_vm15 = vcmp.ge.f32.partialorder %v2041_v26, 0.0  ;;  %v2054_v28 = vmul.f32 %v2465_v22, %v2041_v26 }
 0x461   : > { %v2056_v30 = vsel %vm2045_vm15, %v2041_v26, %v2054_v28 }
 0x462   : > { %v2057_v31 = vpack.c.bf16 %v2056_v30, %v2055_v29 }
 0x464   : > { %2515 = vmatmul.mubr.bf16.vlgmr.msra.gmra.mxu1 %v2057_v31 }
 0x524   : > { %v2163_v33 = vpop.f32.mrf.mxu1 }
 0x525   : > { %v2164_v34 = vadd.f32 %v2466_v32, %v2163_v33 }
 0x526   : > { %v2516_v35 = vpop.f32.mrf.mxu1 }
 0x527   : > { %v2170_v36 = vsub.f32 0.0, %v2164_v34 }
 0x528   : > { %v2166_v37 = vpop.f32.mrf.mxu1 }
 0x529   : > { %v2172_v38 = vmul.f32 1.442695, %v2170_v36  ;;  %v2167_v39 = vadd.f32 %v2466_v32, %v2166_v37 }
 0x52a   : > { %v2517_v40 = vpop.f32.mrf.mxu1 }
 0x52b   : > { %2843 = vpow2.f32 %v2172_v38  ;;  %v2171_v41 = vsub.f32 0.0, %v2167_v39 }
 0x52d   : > { %v2174_v42 = vmul.f32 1.442695, %v2171_v41 }
 0x52f   : > { %2845 = vpow2.f32 %v2174_v42 }
 0x538   : > { %v2844_v43 = vpop.eup %2843 }
 0x539   : > { %v2176_v44 = vadd.f32 1.0, %v2844_v43 }
 0x53b   : > { %2847 = vrcp.f32 %v2176_v44 }
 0x53c   : > { %v2846_v17 = vpop.eup %2845 }
 0x53d   : > { %v2177_v45 = vadd.f32 1.0, %v2846_v17 }
 0x53f   : > { %2849 = vrcp.f32 %v2177_v45 }
 0x548   : > { %v2848_v50 = vpop.eup %2847 }
 0x549   : > { %v2475_v51 = vadd.f32 -1.0, %v2848_v50 }
 0x54b   : > { %v2184_v52 = vmul.f32 %v2475_v51, %v2475_v51 }
 0x54c   : > { %v2850_v53 = vpop.eup %2849 }
 0x54d   : > { %v2200_v54 = vsel %vm2198_vm2, %v2184_v52, 0.0  ;;  %v2476_v14 = vadd.f32 -1.0, %v2850_v53 }
 0x54e   : > { %2202 = vst [vmem:[%s418_s22] sm:$0xff] %v2200_v54 }
 0x54f   : > { %v2185_v55 = vmul.f32 %v2476_v14, %v2476_v14 }
 0x551   : > { %v2201_v15 = vsel %vm2199_vm4, %v2185_v55, 0.0 }
 0x552   : > { %2203 = vst [vmem:[%s418_s22 + $0x8] sm:$0xff] %v2201_v15 }
 0x553 PF: > { %s22_s21 = sadd.s32 1, %s2857_s21  }
 0x554   : > { %p19_p4 = scmp.ge.s32.totalorder %s22_s21, 4  }
 0x556   :  { %21 = sbr.rel (!%p19_p4) target bundleno = 1 (0x1), region = 98 }

</bundles_post_ra>
